<compile_context>
chip_gen: v5e
topology: v5e:2x2
jax: 0.10.0
libtpu: 0.0.40
codegen_flags: <defaults>
</compile_context>

<pallas_src>
import jax
import jax.numpy as jnp
import numpy as np
from jax.experimental import pallas as pl
from jax.experimental.pallas import tpu as pltpu


def _round_up(x, m):
    return (x + m - 1) // m * m


def _nbytes(*arrs):
    return int(sum(int(np.prod(a.shape)) * a.dtype.itemsize for a in arrs))


# --------------------------------------------------------------------------
# Kernel 1: one decode step (attentional LSTM cell + finalHiddenLayer).
# --------------------------------------------------------------------------
def _decode_step_kernel(
    x_ref,       # (1, Bp, E)  bf16  decoder input at step t
    srcT_ref,    # (Bp, S, H)  bf16  attentionLayer(sourceH)   (loop-invariant)
    srcH_ref,    # (Bp, S, 2H) bf16  encoder outputs           (loop-invariant)
    mask_ref,    # (Bp, S)     f32   additive length mask (0 / -1e9)
    h0_ref,      # (Bp, H)     f32   decoder initial hidden
    c0_ref,      # (Bp, H)     f32   decoder initial cell
    wx_ref,      # (E, 4H)     bf16  gate weights for x_t        (i,f,g,o)
    wp_ref,      # (H, 4H)     bf16  gate weights for prevFinalHidden
    wh_ref,      # (H, 4H)     bf16  recurrent gate weights
    bg_ref,      # (1, 4H)     f32   gate bias (b_ih + b_hh)
    wfhh_ref,    # (H, E)      bf16  finalHiddenLayer weight, hi part
    wfhc_ref,    # (2H, E)     bf16  finalHiddenLayer weight, context part
    bfh_ref,     # (1, E)      f32   finalHiddenLayer bias
    fh_ref,      # (1, Bp, E)  bf16  output: finalHidden at step t
    h_scr,       # (Bp, H) f32 scratch
    c_scr,       # (Bp, H) f32 scratch
    prev_scr,    # (Bp, E) f32 scratch (prevFinalHidden)
):
    t = pl.program_id(0)
    H = h_scr.shape[1]

    @pl.when(t == 0)
    def _():
        h_scr[...] = h0_ref[...]
        c_scr[...] = c0_ref[...]
        prev_scr[...] = jnp.zeros_like(prev_scr)

    h = h_scr[...]
    c = c_scr[...]
    prev = prev_scr[...]
    x_t = x_ref[0]                                              # (Bp, E) bf16

    # --- fused LSTM gates: single N=4H matmul per input stream ------------
    gates = (jnp.dot(x_t, wx_ref[...], preferred_element_type=jnp.float32)
             + jnp.dot(prev.astype(jnp.bfloat16), wp_ref[...],
                       preferred_element_type=jnp.float32)
             + jnp.dot(h.astype(jnp.bfloat16), wh_ref[...],
                       preferred_element_type=jnp.float32)
             + bg_ref[...])                                     # (Bp, 4H) f32
    # PyTorch gate order: i, f, g, o (lane-aligned slices when H % 128 == 0)
    i_g = jax.nn.sigmoid(gates[:, 0:H])
    f_g = jax.nn.sigmoid(gates[:, H:2 * H])
    g_g = jnp.tanh(gates[:, 2 * H:3 * H])
    o_g = jax.nn.sigmoid(gates[:, 3 * H:4 * H])
    c_new = f_g * c + i_g * g_g
    h_new = o_g * jnp.tanh(c_new)                               # (Bp, H) f32

    # --- attention (q=1): VPU multiply + cross-lane reduce, not M=1 bmm ----
    scores = jnp.sum(h_new[:, None, :] * srcT_ref[...], axis=-1)   # (Bp, S) f32
    scores = scores + mask_ref[...]
    scores = scores - jnp.max(scores, axis=-1, keepdims=True)
    e = jnp.exp(scores)
    attn = e * pl.reciprocal(jnp.sum(e, axis=-1, keepdims=True), approx=True)
    ctx = jnp.sum(attn[:, :, None] * srcH_ref[...], axis=1)        # (Bp, 2H) f32

    # --- finalHiddenLayer + tanh (concat-free split matmul) ----------------
    # TODO(synk): nn.Dropout is eval-mode identity here (no train-time masking).
    fh = jnp.tanh(
        jnp.dot(h_new.astype(jnp.bfloat16), wfhh_ref[...],
                preferred_element_type=jnp.float32)
        + jnp.dot(ctx.astype(jnp.bfloat16), wfhc_ref[...],
                  preferred_element_type=jnp.float32)
        + bfh_ref[...])                                          # (Bp, E) f32

    fh_ref[0] = fh.astype(fh_ref.dtype)
    h_scr[...] = h_new
    c_scr[...] = c_new
    prev_scr[...] = fh


# --------------------------------------------------------------------------
# Kernel 2: wordPredictor as a tiled (rows, E) @ (E, Vp) + bias matmul.
# --------------------------------------------------------------------------
def _predictor_kernel(fh_ref, w_ref, b_ref, o_ref):
    o_ref[...] = (jnp.dot(fh_ref[...], w_ref[...],
                          preferred_element_type=jnp.float32)
                  + b_ref[...]).astype(o_ref.dtype)


# --------------------------------------------------------------------------
# Wrapper
# --------------------------------------------------------------------------
def encdec_forward(inputTarget, lengthsTarget, lengthsSource, h0, c0, sourceH, params):
    B, _, E = inputTarget.shape
    T = int(max(lengthsTarget))                  # maxLen, as in the PyTorch forward
    _, S, H2 = sourceH.shape
    H = H2 // 2
    V = params["w_pred_t"].shape[1]
    assert E == H, "EncDec is only shape-consistent when targetEmbedDim == hiddenDim"

    f32, bf16 = jnp.float32, jnp.bfloat16
    Bp = _round_up(max(B, 8), 8)                 # sublane-pad the batch
    Vp = _round_up(V, 128)                       # lane-dense logits

    # time-major decoder input, batch-padded, bf16
    x_tbe = jnp.transpose(inputTarget[:, :T, :], (1, 0, 2))
    x_tbe = jnp.pad(x_tbe, ((0, 0), (0, Bp - B), (0, 0))).astype(bf16)

    # hoisted loop-invariants: attention projection + additive length mask
    srcH_f = jnp.pad(sourceH.astype(f32), ((0, Bp - B), (0, 0), (0, 0)))
    srcT = jnp.einsum("bsd,dh->bsh", srcH_f, params["w_att_t"]).astype(bf16)
    srcH = srcH_f.astype(bf16)
    lens = jnp.concatenate([jnp.asarray(lengthsSource, jnp.int32),
                            jnp.full((Bp - B,), S, jnp.int32)])  # pad rows: full length
    mask = jnp.where(jnp.arange(S)[None, :] < lens[:, None], 0.0, -1e9).astype(f32)

    h0p = jnp.pad(h0.astype(f32), ((0, Bp - B), (0, 0)))
    c0p = jnp.pad(c0.astype(f32), ((0, Bp - B), (0, 0)))

    # decoder weights kept fused over gates (N = 4H), split per input stream
    w_ih_t, w_hh_t = params["w_ih_t"], params["w_hh_t"]          # (E+H,4H), (H,4H)
    wx = w_ih_t[:E].astype(bf16)                                  # (E, 4H)
    wp = w_ih_t[E:].astype(bf16)                                  # (H, 4H)
    wh = w_hh_t.astype(bf16)                                      # (H, 4H)
    bg = params["b_lstm"].astype(f32)                             # (1, 4H)
    wfhh = params["w_fh_t"][:H].astype(bf16)                      # (H, E)
    wfhc = params["w_fh_t"][H:].astype(bf16)                      # (2H, E)
    bfh = params["b_fh"].astype(f32)                              # (1, E)

    # ---------------- decode recurrence: grid over T ----------------------
    def _inv(shape):
        n = len(shape)
        return pl.BlockSpec(shape, lambda t, _n=n: (0,) * _n)

    grid_spec = pltpu.PrefetchScalarGridSpec(
        num_scalar_prefetch=0,
        grid=(T,),
        in_specs=[
            pl.BlockSpec((1, Bp, E), lambda t: (t, 0, 0)),        # x_t
            _inv((Bp, S, H)), _inv((Bp, S, H2)), _inv((Bp, S)),
            _inv((Bp, H)), _inv((Bp, H)),
            _inv((E, 4 * H)), _inv((H, 4 * H)), _inv((H, 4 * H)), _inv((1, 4 * H)),
            _inv((H, E)), _inv((H2, E)), _inv((1, E)),
        ],
        out_specs=pl.BlockSpec((1, Bp, E), lambda t: (t, 0, 0)),
        scratch_shapes=[pltpu.VMEM((Bp, H), f32),                 # h
                        pltpu.VMEM((Bp, H), f32),                 # c
                        pltpu.VMEM((Bp, E), f32)],                # prevFinalHidden
    )

    invariant_bytes = _nbytes(srcT, srcH, mask, h0p, c0p, wx, wp, wh, bg, wfhh, wfhc, bfh)
    per_step_bytes = 2 * (Bp * E * 2) * 2        # x block + fh block, double-buffered
    scratch_bytes = Bp * (2 * H + E) * 4
    vmem_decode = 2 * invariant_bytes + per_step_bytes + scratch_bytes
    vmem_decode = int(min(max(vmem_decode * 2, 16 << 20), 64 << 20))

    flops_step = (2 * Bp * 4 * H * (E + 2 * H)      # gates
                  + 2 * Bp * S * 3 * H              # scores + context
                  + 2 * Bp * E * 3 * H)             # finalHiddenLayer
    decode_cost = pl.CostEstimate(
        flops=T * flops_step,
        transcendentals=T * Bp * (5 * H + S + 1),
        bytes_accessed=invariant_bytes + _nbytes(x_tbe) + T * Bp * E * 2)

    fh_all = pl.pallas_call(
        _decode_step_kernel,
        out_shape=jax.ShapeDtypeStruct((T, Bp, E), bf16),
        grid_spec=grid_spec,
        compiler_params=pltpu.CompilerParams(
            dimension_semantics=("arbitrary",),
            vmem_limit_bytes=vmem_decode),
        cost_estimate=decode_cost,
    )(x_tbe, srcT, srcH, mask, h0p, c0p, wx, wp, wh, bg, wfhh, wfhc, bfh)

    # ---------------- word predictor: hoisted, tiled, parallel -------------
    # PyTorch row order is b*maxLen + t -> reorder the small fh tensor first.
    fh_rows = jnp.transpose(fh_all, (1, 0, 2))[:B].reshape(B * T, E)   # bf16
    M = B * T
    TM = 128 if M >= 128 else _round_up(M, 8)
    Mp = _round_up(M, TM)
    TN = next(c for c in (512, 256, 128) if Vp % c == 0)
    fh_rows = jnp.pad(fh_rows, ((0, Mp - M), (0, 0)))

    wpred = jnp.pad(params["w_pred_t"], ((0, 0), (0, Vp - V))).astype(bf16)  # (E, Vp)
    bpred = jnp.pad(params["b_pred"], ((0, 0), (0, Vp - V))).astype(f32)     # (1, Vp)

    vmem_pred = 2 * (TM * E * 2 + E * TN * 2 + TN * 4 + TM * TN * 4)
    vmem_pred = int(min(max(vmem_pred * 2, 16 << 20), 64 << 20))
    pred_cost = pl.CostEstimate(
        flops=2 * Mp * E * Vp,
        transcendentals=0,
        bytes_accessed=Mp * E * 2 + E * Vp * 2 + Vp * 4 + Mp * Vp * 4)

    logits = pl.pallas_call(
        _predictor_kernel,
        out_shape=jax.ShapeDtypeStruct((Mp, Vp), f32),
        grid_spec=pltpu.PrefetchScalarGridSpec(
            num_scalar_prefetch=0,
            grid=(Mp // TM, Vp // TN),
            in_specs=[pl.BlockSpec((TM, E), lambda i, j: (i, 0)),
                      pl.BlockSpec((E, TN), lambda i, j: (0, j)),
                      pl.BlockSpec((1, TN), lambda i, j: (0, j))],
            out_specs=pl.BlockSpec((TM, TN), lambda i, j: (i, j)),
        ),
        compiler_params=pltpu.CompilerParams(
            dimension_semantics=("parallel", "parallel"),
            vmem_limit_bytes=vmem_pred),
        cost_estimate=pred_cost,
    )(fh_rows, wpred, bpred)

    return logits[:M, :V]                                       # (B*T, V)


# --------------------------------------------------------------------------
# Pure-JAX reference (same math as the PyTorch forward, f32, exact softmax).
# --------------------------------------------------------------------------
def encdec_forward_ref(inputTarget, lengthsTarget, lengthsSource, h0, c0, sourceH, params):
    B, _, E = inputTarget.shape
    T = int(max(lengthsTarget))
    _, S, H2 = sourceH.shape
    H = H2 // 2
    srcT = jnp.einsum("bsd,dh->bsh", sourceH, params["w_att_t"])
    s_idx = jnp.arange(S)[None, :]
    mask = jnp.where(s_idx < jnp.asarray(lengthsSource)[:, None], 0.0, -1024.0)
    h, c = h0, c0
    prev = jnp.zeros((B, E), jnp.float32)
    outs = []
    for t in range(T):
        xcat = jnp.concatenate([inputTarget[:, t, :], prev], axis=1)
        gates = xcat @ params["w_ih_t"] + h @ params["w_hh_t"] + params["b_lstm"]
        i_g = jax.nn.sigmoid(gates[:, 0:H])
        f_g = jax.nn.sigmoid(gates[:, H:2 * H])
        g_g = jnp.tanh(gates[:, 2 * H:3 * H])
        o_g = jax.nn.sigmoid(gates[:, 3 * H:4 * H])
        c = f_g * c + i_g * g_g
        h = o_g * jnp.tanh(c)
        scores = jnp.einsum("bh,bsh->bs", h, srcT) + mask
        attn = jax.nn.softmax(scores, axis=1)
        ctx = jnp.einsum("bs,bsd->bd", attn, sourceH)
        fh = jnp.tanh(jnp.concatenate([h, ctx], axis=1) @ params["w_fh_t"] + params["b_fh"])
        prev = fh
        outs.append(fh @ params["w_pred_t"] + params["b_pred"])
    fhs = jnp.stack(outs, axis=1)          # (B, T, V)
    return fhs.reshape(B * T, -1)


def init_params(key, E, H, V):
    # Deterministic synthetic init (shapes follow EncDec.__init__). The module's
    # initWeight zeroes attentionLayer / wordPredictor; we use small uniform
    # values instead so the kernel output is non-trivial.
    ks = jax.random.split(key, 5)
    u = lambda k, shape: jax.random.uniform(k, shape, jnp.float32, -0.1, 0.1)
    w_ih = u(ks[0], (4 * H, E + H))
    w_hh = u(ks[1], (4 * H, H))
    b_ih = jnp.zeros((4 * H,), jnp.float32)
    b_hh = jnp.zeros((4 * H,), jnp.float32).at[H:2 * H].set(1.0)  # forget-gate bias = 1
    w_att = u(ks[2], (H, 2 * H))
    w_fh = u(ks[3], (E, 3 * H))
    b_fh = jnp.zeros((E,), jnp.float32)
    w_pred = u(ks[4], (V, E))
    b_pred = jnp.zeros((V,), jnp.float32)
    return {
        "w_ih_t": w_ih.T, "w_hh_t": w_hh.T,
        "b_lstm": (b_ih + b_hh).reshape(1, 4 * H),
        "w_att_t": w_att.T,
        "w_fh_t": w_fh.T, "b_fh": b_fh.reshape(1, E),
        "w_pred_t": w_pred.T, "b_pred": b_pred.reshape(1, V),
    }


if __name__ == "__main__":
    B, S, T, H, E, V = 2, 8, 6, 32, 32, 64   # targetEmbedDim == hiddenDim (see note)
    key = jax.random.PRNGKey(0)
    kp, k1, k2, k3, k4 = jax.random.split(key, 5)

    params = init_params(kp, E, H, V)
    inputTarget = jax.random.normal(k1, (B, T, E), jnp.float32)     # embedded target tokens
    sourceH = jax.random.normal(k2, (B, S, 2 * H), jnp.float32)     # bi-LSTM encoder outputs
    h0 = jax.random.normal(k3, (B, H), jnp.float32)                 # hidden0Target[0][0]
    c0 = jax.random.normal(k4, (B, H), jnp.float32)                 # hidden0Target[1][0]
    lengthsTarget = [6, 5]
    lengthsSource = [8, 5]

    out = encdec_forward(inputTarget, lengthsTarget, lengthsSource, h0, c0, sourceH, params)
    out = jax.block_until_ready(out)

    ref = encdec_forward_ref(inputTarget, lengthsTarget, lengthsSource, h0, c0, sourceH, params)
    # tolerance covers bf16 weights/activations in the kernel and the
    # approximate EUP reciprocal in the softmax denominator; the f32 reference
    # divides exactly.
    np.testing.assert_allclose(np.asarray(out), np.asarray(ref), atol=3e-2, rtol=3e-2)
    assert out.shape == (B * T, V)
    print("KERNEL_OK")
</pallas_src>

<mosaic_0001>
module attributes {stable_mosaic.version = 11 : i64} {
  func.func @_decode_step_kernel(%arg0: i32, %arg1: memref<1x8x32xbf16, #tpu.memory_space<vmem>>, %arg2: memref<8x8x32xbf16, #tpu.memory_space<vmem>>, %arg3: memref<8x8x64xbf16, #tpu.memory_space<vmem>>, %arg4: memref<8x8xf32, #tpu.memory_space<vmem>>, %arg5: memref<8x32xf32, #tpu.memory_space<vmem>>, %arg6: memref<8x32xf32, #tpu.memory_space<vmem>>, %arg7: memref<32x128xbf16, #tpu.memory_space<vmem>>, %arg8: memref<32x128xbf16, #tpu.memory_space<vmem>>, %arg9: memref<32x128xbf16, #tpu.memory_space<vmem>>, %arg10: memref<1x128xf32, #tpu.memory_space<vmem>>, %arg11: memref<32x32xbf16, #tpu.memory_space<vmem>>, %arg12: memref<64x32xbf16, #tpu.memory_space<vmem>>, %arg13: memref<1x32xf32, #tpu.memory_space<vmem>>, %arg14: memref<1x8x32xbf16, #tpu.memory_space<vmem>>, %arg15: memref<8x32xf32, #tpu.memory_space<vmem>>, %arg16: memref<8x32xf32, #tpu.memory_space<vmem>>, %arg17: memref<8x32xf32, #tpu.memory_space<vmem>>) attributes {dimension_semantics = [#tpu.dimension_semantics<arbitrary>], iteration_bounds = array<i64: 6>, scalar_prefetch = 0 : i64, scratch_operands = 3 : i64, tpu.core_type = #tpu.core_type<tc>, window_params = [{transform_indices = @transform_0, window_bounds = array<i64: 1, 8, 32>}, {pipeline_mode = #tpu.pipeline_mode<synchronous>, transform_indices = @transform_1, window_bounds = array<i64: 8, 8, 32>}, {pipeline_mode = #tpu.pipeline_mode<synchronous>, transform_indices = @transform_2, window_bounds = array<i64: 8, 8, 64>}, {pipeline_mode = #tpu.pipeline_mode<synchronous>, transform_indices = @transform_3, window_bounds = array<i64: 8, 8>}, {pipeline_mode = #tpu.pipeline_mode<synchronous>, transform_indices = @transform_4, window_bounds = array<i64: 8, 32>}, {pipeline_mode = #tpu.pipeline_mode<synchronous>, transform_indices = @transform_5, window_bounds = array<i64: 8, 32>}, {pipeline_mode = #tpu.pipeline_mode<synchronous>, transform_indices = @transform_6, window_bounds = array<i64: 32, 128>}, {pipeline_mode = #tpu.pipeline_mode<synchronous>, transform_indices = @transform_7, window_bounds = array<i64: 32, 128>}, {pipeline_mode = #tpu.pipeline_mode<synchronous>, transform_indices = @transform_8, window_bounds = array<i64: 32, 128>}, {pipeline_mode = #tpu.pipeline_mode<synchronous>, transform_indices = @transform_9, window_bounds = array<i64: 1, 128>}, {pipeline_mode = #tpu.pipeline_mode<synchronous>, transform_indices = @transform_10, window_bounds = array<i64: 32, 32>}, {pipeline_mode = #tpu.pipeline_mode<synchronous>, transform_indices = @transform_11, window_bounds = array<i64: 64, 32>}, {pipeline_mode = #tpu.pipeline_mode<synchronous>, transform_indices = @transform_12, window_bounds = array<i64: 1, 32>}, {transform_indices = @transform_13, window_bounds = array<i64: 1, 8, 32>}]} {
    %c0_i32 = arith.constant 0 : i32
    %0 = arith.cmpi eq, %arg0, %c0_i32 : i32
    %1 = arith.extui %0 : i1 to i32
    %c0_i32_0 = arith.constant 0 : i32
    %2 = arith.cmpi ne, %1, %c0_i32_0 : i32
    scf.if %2 {
      %c0_51 = arith.constant 0 : index
      %c0_52 = arith.constant 0 : index
      %88 = vector.load %arg5[%c0_51, %c0_52] : memref<8x32xf32, #tpu.memory_space<vmem>>, vector<8x32xf32>
      %c0_53 = arith.constant 0 : index
      %c0_54 = arith.constant 0 : index
      %89 = vector.load %arg15[%c0_53, %c0_54] : memref<8x32xf32, #tpu.memory_space<vmem>>, vector<8x32xf32>
      tpu.vector_store %arg15[%c0_53, %c0_54], %88 {strides = array<i32>} : memref<8x32xf32, #tpu.memory_space<vmem>>, vector<8x32xf32>,
      %c0_55 = arith.constant 0 : index
      %c0_56 = arith.constant 0 : index
      %90 = vector.load %arg6[%c0_55, %c0_56] : memref<8x32xf32, #tpu.memory_space<vmem>>, vector<8x32xf32>
      %c0_57 = arith.constant 0 : index
      %c0_58 = arith.constant 0 : index
      %91 = vector.load %arg16[%c0_57, %c0_58] : memref<8x32xf32, #tpu.memory_space<vmem>>, vector<8x32xf32>
      tpu.vector_store %arg16[%c0_57, %c0_58], %90 {strides = array<i32>} : memref<8x32xf32, #tpu.memory_space<vmem>>, vector<8x32xf32>,
      %cst_59 = arith.constant 0.000000e+00 : f32
      %92 = vector.broadcast %cst_59 : f32 to vector<8x32xf32>
      %c0_60 = arith.constant 0 : index
      %c0_61 = arith.constant 0 : index
      %93 = vector.load %arg17[%c0_60, %c0_61] : memref<8x32xf32, #tpu.memory_space<vmem>>, vector<8x32xf32>
      tpu.vector_store %arg17[%c0_60, %c0_61], %92 {strides = array<i32>} : memref<8x32xf32, #tpu.memory_space<vmem>>, vector<8x32xf32>,
    } else {
    }
    %c0 = arith.constant 0 : index
    %c0_1 = arith.constant 0 : index
    %3 = vector.load %arg15[%c0, %c0_1] : memref<8x32xf32, #tpu.memory_space<vmem>>, vector<8x32xf32>
    %c0_2 = arith.constant 0 : index
    %c0_3 = arith.constant 0 : index
    %4 = vector.load %arg16[%c0_2, %c0_3] : memref<8x32xf32, #tpu.memory_space<vmem>>, vector<8x32xf32>
    %c0_4 = arith.constant 0 : index
    %c0_5 = arith.constant 0 : index
    %5 = vector.load %arg17[%c0_4, %c0_5] : memref<8x32xf32, #tpu.memory_space<vmem>>, vector<8x32xf32>
    %c0_6 = arith.constant 0 : index
    %c0_7 = arith.constant 0 : index
    %c0_8 = arith.constant 0 : index
    %6 = vector.load %arg1[%c0_6, %c0_7, %c0_8] : memref<1x8x32xbf16, #tpu.memory_space<vmem>>, vector<1x8x32xbf16>
    %7 = vector.shape_cast %6 : vector<1x8x32xbf16> to vector<8x32xbf16>
    %c0_9 = arith.constant 0 : index
    %c0_10 = arith.constant 0 : index
    %8 = vector.load %arg7[%c0_9, %c0_10] : memref<32x128xbf16, #tpu.memory_space<vmem>>, vector<32x128xbf16>
    %cst = arith.constant dense<0.000000e+00> : vector<8x128xf32>
    %9 = tpu.matmul %7, %8, %cst {dimension_numbers = #tpu.dot_dimension_numbers<[1], [0], [0], [1], [0, 0, 1, 1], [], []>} : vector<8x32xbf16>, vector<32x128xbf16>, vector<8x128xf32> -> vector<8x128xf32>
    %10 = arith.truncf %5 : vector<8x32xf32> to vector<8x32xbf16>
    %c0_11 = arith.constant 0 : index
    %c0_12 = arith.constant 0 : index
    %11 = vector.load %arg8[%c0_11, %c0_12] : memref<32x128xbf16, #tpu.memory_space<vmem>>, vector<32x128xbf16>
    %cst_13 = arith.constant dense<0.000000e+00> : vector<8x128xf32>
    %12 = tpu.matmul %10, %11, %cst_13 {dimension_numbers = #tpu.dot_dimension_numbers<[1], [0], [0], [1], [0, 0, 1, 1], [], []>} : vector<8x32xbf16>, vector<32x128xbf16>, vector<8x128xf32> -> vector<8x128xf32>
    %13 = arith.addf %9, %12 : vector<8x128xf32>
    %14 = arith.truncf %3 : vector<8x32xf32> to vector<8x32xbf16>
    %c0_14 = arith.constant 0 : index
    %c0_15 = arith.constant 0 : index
    %15 = vector.load %arg9[%c0_14, %c0_15] : memref<32x128xbf16, #tpu.memory_space<vmem>>, vector<32x128xbf16>
    %cst_16 = arith.constant dense<0.000000e+00> : vector<8x128xf32>
    %16 = tpu.matmul %14, %15, %cst_16 {dimension_numbers = #tpu.dot_dimension_numbers<[1], [0], [0], [1], [0, 0, 1, 1], [], []>} : vector<8x32xbf16>, vector<32x128xbf16>, vector<8x128xf32> -> vector<8x128xf32>
    %17 = arith.addf %13, %16 : vector<8x128xf32>
    %c0_17 = arith.constant 0 : index
    %c0_18 = arith.constant 0 : index
    %18 = vector.load %arg10[%c0_17, %c0_18] : memref<1x128xf32, #tpu.memory_space<vmem>>, vector<1x128xf32>
    %19 = vector.broadcast %18 : vector<1x128xf32> to vector<8x128xf32>
    %20 = arith.addf %17, %19 : vector<8x128xf32>
    %21 = vector.extract_strided_slice %20 {offsets = [0, 0], sizes = [8, 32], strides = [1, 1]} : vector<8x128xf32> to vector<8x32xf32>
    %22 = arith.negf %21 : vector<8x32xf32>
    %23 = math.exp %22 : vector<8x32xf32>
    %cst_19 = arith.constant 1.000000e+00 : f32
    %24 = vector.broadcast %cst_19 : f32 to vector<8x32xf32>
    %25 = arith.addf %24, %23 : vector<8x32xf32>
    %26 = arith.divf %24, %25 : vector<8x32xf32>
    %27 = vector.extract_strided_slice %20 {offsets = [0, 32], sizes = [8, 32], strides = [1, 1]} : vector<8x128xf32> to vector<8x32xf32>
    %28 = arith.negf %27 : vector<8x32xf32>
    %29 = math.exp %28 : vector<8x32xf32>
    %cst_20 = arith.constant 1.000000e+00 : f32
    %30 = vector.broadcast %cst_20 : f32 to vector<8x32xf32>
    %31 = arith.addf %30, %29 : vector<8x32xf32>
    %32 = arith.divf %30, %31 : vector<8x32xf32>
    %33 = vector.extract_strided_slice %20 {offsets = [0, 64], sizes = [8, 32], strides = [1, 1]} : vector<8x128xf32> to vector<8x32xf32>
    %34 = math.tanh %33 : vector<8x32xf32>
    %35 = vector.extract_strided_slice %20 {offsets = [0, 96], sizes = [8, 32], strides = [1, 1]} : vector<8x128xf32> to vector<8x32xf32>
    %36 = arith.negf %35 : vector<8x32xf32>
    %37 = math.exp %36 : vector<8x32xf32>
    %cst_21 = arith.constant 1.000000e+00 : f32
    %38 = vector.broadcast %cst_21 : f32 to vector<8x32xf32>
    %39 = arith.addf %38, %37 : vector<8x32xf32>
    %40 = arith.divf %38, %39 : vector<8x32xf32>
    %41 = arith.mulf %32, %4 : vector<8x32xf32>
    %42 = arith.mulf %26, %34 : vector<8x32xf32>
    %43 = arith.addf %41, %42 : vector<8x32xf32>
    %44 = math.tanh %43 : vector<8x32xf32>
    %45 = arith.mulf %40, %44 : vector<8x32xf32>
    %46 = vector.shape_cast %45 : vector<8x32xf32> to vector<8x1x32xf32>
    %c0_22 = arith.constant 0 : index
    %c0_23 = arith.constant 0 : index
    %c0_24 = arith.constant 0 : index
    %47 = vector.load %arg2[%c0_22, %c0_23, %c0_24] : memref<8x8x32xbf16, #tpu.memory_space<vmem>>, vector<8x8x32xbf16>
    %48 = arith.extf %47 : vector<8x8x32xbf16> to vector<8x8x32xf32>
    %49 = vector.broadcast %46 : vector<8x1x32xf32> to vector<8x8x32xf32>
    %50 = arith.mulf %49, %48 : vector<8x8x32xf32>
    %cst_25 = arith.constant dense<0.000000e+00> : vector<8x8xf32>
    %51 = vector.multi_reduction <add>, %50, %cst_25 [2] : vector<8x8x32xf32> to vector<8x8xf32>
    %c0_26 = arith.constant 0 : index
    %c0_27 = arith.constant 0 : index
    %52 = vector.load %arg4[%c0_26, %c0_27] : memref<8x8xf32, #tpu.memory_space<vmem>>, vector<8x8xf32>
    %53 = arith.addf %51, %52 : vector<8x8xf32>
    %cst_28 = arith.constant dense<0xFF800000> : vector<8xf32>
    %54 = vector.multi_reduction <maximumf>, %53, %cst_28 [1] : vector<8x8xf32> to vector<8xf32>
    %55 = vector.shape_cast %54 : vector<8xf32> to vector<8x1xf32>
    %56 = vector.broadcast %55 : vector<8x1xf32> to vector<8x8xf32>
    %57 = arith.subf %53, %56 : vector<8x8xf32>
    %58 = math.exp %57 : vector<8x8xf32>
    %cst_29 = arith.constant dense<0.000000e+00> : vector<8xf32>
    %59 = vector.multi_reduction <add>, %58, %cst_29 [1] : vector<8x8xf32> to vector<8xf32>
    %60 = vector.shape_cast %59 : vector<8xf32> to vector<8x1xf32>
    %61 = tpu.reciprocal %60 {approx = true} : vector<8x1xf32> -> vector<8x1xf32>
    %62 = vector.broadcast %61 : vector<8x1xf32> to vector<8x8xf32>
    %63 = arith.mulf %58, %62 : vector<8x8xf32>
    %64 = vector.shape_cast %63 : vector<8x8xf32> to vector<8x8x1xf32>
    %c0_30 = arith.constant 0 : index
    %c0_31 = arith.constant 0 : index
    %c0_32 = arith.constant 0 : index
    %65 = vector.load %arg3[%c0_30, %c0_31, %c0_32] : memref<8x8x64xbf16, #tpu.memory_space<vmem>>, vector<8x8x64xbf16>
    %66 = arith.extf %65 : vector<8x8x64xbf16> to vector<8x8x64xf32>
    %67 = vector.broadcast %64 : vector<8x8x1xf32> to vector<8x8x64xf32>
    %68 = arith.mulf %67, %66 : vector<8x8x64xf32>
    %cst_33 = arith.constant dense<0.000000e+00> : vector<8x64xf32>
    %69 = vector.multi_reduction <add>, %68, %cst_33 [1] : vector<8x8x64xf32> to vector<8x64xf32>
    %70 = arith.truncf %45 : vector<8x32xf32> to vector<8x32xbf16>
    %c0_34 = arith.constant 0 : index
    %c0_35 = arith.constant 0 : index
    %71 = vector.load %arg11[%c0_34, %c0_35] : memref<32x32xbf16, #tpu.memory_space<vmem>>, vector<32x32xbf16>
    %cst_36 = arith.constant dense<0.000000e+00> : vector<8x32xf32>
    %72 = tpu.matmul %70, %71, %cst_36 {dimension_numbers = #tpu.dot_dimension_numbers<[1], [0], [0], [1], [0, 0, 1, 1], [], []>} : vector<8x32xbf16>, vector<32x32xbf16>, vector<8x32xf32> -> vector<8x32xf32>
    %73 = arith.truncf %69 : vector<8x64xf32> to vector<8x64xbf16>
    %c0_37 = arith.constant 0 : index
    %c0_38 = arith.constant 0 : index
    %74 = vector.load %arg12[%c0_37, %c0_38] : memref<64x32xbf16, #tpu.memory_space<vmem>>, vector<64x32xbf16>
    %cst_39 = arith.constant dense<0.000000e+00> : vector<8x32xf32>
    %75 = tpu.matmul %73, %74, %cst_39 {dimension_numbers = #tpu.dot_dimension_numbers<[1], [0], [0], [1], [0, 0, 1, 1], [], []>} : vector<8x64xbf16>, vector<64x32xbf16>, vector<8x32xf32> -> vector<8x32xf32>
    %76 = arith.addf %72, %75 : vector<8x32xf32>
    %c0_40 = arith.constant 0 : index
    %c0_41 = arith.constant 0 : index
    %77 = vector.load %arg13[%c0_40, %c0_41] : memref<1x32xf32, #tpu.memory_space<vmem>>, vector<1x32xf32>
    %78 = vector.broadcast %77 : vector<1x32xf32> to vector<8x32xf32>
    %79 = arith.addf %76, %78 : vector<8x32xf32>
    %80 = math.tanh %79 : vector<8x32xf32>
    %81 = arith.truncf %80 : vector<8x32xf32> to vector<8x32xbf16>
    %c0_42 = arith.constant 0 : index
    %c0_43 = arith.constant 0 : index
    %c0_44 = arith.constant 0 : index
    %82 = vector.load %arg14[%c0_42, %c0_43, %c0_44] : memref<1x8x32xbf16, #tpu.memory_space<vmem>>, vector<1x8x32xbf16>
    %83 = vector.shape_cast %82 : vector<1x8x32xbf16> to vector<8x32xbf16>
    %84 = vector.shape_cast %81 : vector<8x32xbf16> to vector<1x8x32xbf16>
    tpu.vector_store %arg14[%c0_42, %c0_43, %c0_44], %84 {strides = array<i32>} : memref<1x8x32xbf16, #tpu.memory_space<vmem>>, vector<1x8x32xbf16>,
    %c0_45 = arith.constant 0 : index
    %c0_46 = arith.constant 0 : index
    %85 = vector.load %arg15[%c0_45, %c0_46] : memref<8x32xf32, #tpu.memory_space<vmem>>, vector<8x32xf32>
    tpu.vector_store %arg15[%c0_45, %c0_46], %45 {strides = array<i32>} : memref<8x32xf32, #tpu.memory_space<vmem>>, vector<8x32xf32>,
    %c0_47 = arith.constant 0 : index
    %c0_48 = arith.constant 0 : index
    %86 = vector.load %arg16[%c0_47, %c0_48] : memref<8x32xf32, #tpu.memory_space<vmem>>, vector<8x32xf32>
    tpu.vector_store %arg16[%c0_47, %c0_48], %43 {strides = array<i32>} : memref<8x32xf32, #tpu.memory_space<vmem>>, vector<8x32xf32>,
    %c0_49 = arith.constant 0 : index
    %c0_50 = arith.constant 0 : index
    %87 = vector.load %arg17[%c0_49, %c0_50] : memref<8x32xf32, #tpu.memory_space<vmem>>, vector<8x32xf32>
    tpu.vector_store %arg17[%c0_49, %c0_50], %80 {strides = array<i32>} : memref<8x32xf32, #tpu.memory_space<vmem>>, vector<8x32xf32>,
    return
  }
  func.func @transform_0(%arg0: i32) -> (i32, i32, i32) {
    %c0_i32 = arith.constant 0 : i32
    %c0_i32_0 = arith.constant 0 : i32
    %c0_i32_1 = arith.constant 0 : i32
    return %arg0, %c0_i32, %c0_i32_0 : i32, i32, i32
  }
  func.func @transform_1(%arg0: i32) -> (i32, i32, i32) {
    %c0_i32 = arith.constant 0 : i32
    %c0_i32_0 = arith.constant 0 : i32
    %c0_i32_1 = arith.constant 0 : i32
    %c0_i32_2 = arith.constant 0 : i32
    return %c0_i32, %c0_i32_0, %c0_i32_1 : i32, i32, i32
  }
  func.func @transform_2(%arg0: i32) -> (i32, i32, i32) {
    %c0_i32 = arith.constant 0 : i32
    %c0_i32_0 = arith.constant 0 : i32
    %c0_i32_1 = arith.constant 0 : i32
    %c0_i32_2 = arith.constant 0 : i32
    return %c0_i32, %c0_i32_0, %c0_i32_1 : i32, i32, i32
  }
  func.func @transform_3(%arg0: i32) -> (i32, i32) {
    %c0_i32 = arith.constant 0 : i32
    %c0_i32_0 = arith.constant 0 : i32
    %c0_i32_1 = arith.constant 0 : i32
    return %c0_i32, %c0_i32_0 : i32, i32
  }
  func.func @transform_4(%arg0: i32) -> (i32, i32) {
    %c0_i32 = arith.constant 0 : i32
    %c0_i32_0 = arith.constant 0 : i32
    %c0_i32_1 = arith.constant 0 : i32
    return %c0_i32, %c0_i32_0 : i32, i32
  }
  func.func @transform_5(%arg0: i32) -> (i32, i32) {
    %c0_i32 = arith.constant 0 : i32
    %c0_i32_0 = arith.constant 0 : i32
    %c0_i32_1 = arith.constant 0 : i32
    return %c0_i32, %c0_i32_0 : i32, i32
  }
  func.func @transform_6(%arg0: i32) -> (i32, i32) {
    %c0_i32 = arith.constant 0 : i32
    %c0_i32_0 = arith.constant 0 : i32
    %c0_i32_1 = arith.constant 0 : i32
    return %c0_i32, %c0_i32_0 : i32, i32
  }
  func.func @transform_7(%arg0: i32) -> (i32, i32) {
    %c0_i32 = arith.constant 0 : i32
    %c0_i32_0 = arith.constant 0 : i32
    %c0_i32_1 = arith.constant 0 : i32
    return %c0_i32, %c0_i32_0 : i32, i32
  }
  func.func @transform_8(%arg0: i32) -> (i32, i32) {
    %c0_i32 = arith.constant 0 : i32
    %c0_i32_0 = arith.constant 0 : i32
    %c0_i32_1 = arith.constant 0 : i32
    return %c0_i32, %c0_i32_0 : i32, i32
  }
  func.func @transform_9(%arg0: i32) -> (i32, i32) {
    %c0_i32 = arith.constant 0 : i32
    %c0_i32_0 = arith.constant 0 : i32
    %c0_i32_1 = arith.constant 0 : i32
    return %c0_i32, %c0_i32_0 : i32, i32
  }
  func.func @transform_10(%arg0: i32) -> (i32, i32) {
    %c0_i32 = arith.constant 0 : i32
    %c0_i32_0 = arith.constant 0 : i32
    %c0_i32_1 = arith.constant 0 : i32
    return %c0_i32, %c0_i32_0 : i32, i32
  }
  func.func @transform_11(%arg0: i32) -> (i32, i32) {
    %c0_i32 = arith.constant 0 : i32
    %c0_i32_0 = arith.constant 0 : i32
    %c0_i32_1 = arith.constant 0 : i32
    return %c0_i32, %c0_i32_0 : i32, i32
  }
  func.func @transform_12(%arg0: i32) -> (i32, i32) {
    %c0_i32 = arith.constant 0 : i32
    %c0_i32_0 = arith.constant 0 : i32
    %c0_i32_1 = arith.constant 0 : i32
    return %c0_i32, %c0_i32_0 : i32, i32
  }
  func.func @transform_13(%arg0: i32) -> (i32, i32, i32) {
    %c0_i32 = arith.constant 0 : i32
    %c0_i32_0 = arith.constant 0 : i32
    %c0_i32_1 = arith.constant 0 : i32
    return %arg0, %c0_i32, %c0_i32_0 : i32, i32, i32
  }
}

</mosaic_0001>

<bundles_post_ra>
// kernel: tpu_custom_call.1
= control target key start
LH: loop header
LB: loop body
LE: loop exit
PB: predicated region body
PF: predicated region fallthrough
CT: control target
= control target key end

     0   :  { %s2613_s0 = inlined_call_operand.hbm [shape: bf16[6,8,32], index: 0, kind: input, shape index: {}]   ;;  %s2614_s1 = inlined_call_operand.vmem [shape: bf16[8,8,32], index: 1, kind: input, shape index: {}]   ;;  %s2615_s2 = inlined_call_operand.hbm [shape: bf16[8,8,64], index: 2, kind: input, shape index: {}]   ;;  %s2616_s3 = inlined_call_operand.hbm [shape: f32[8,8], index: 3, kind: input, shape index: {}]   ;;  %s2617_s4 = inlined_call_operand.hbm [shape: f32[8,32], index: 4, kind: input, shape index: {}]   ;;  %s2618_s5 = inlined_call_operand.hbm [shape: f32[8,32], index: 5, kind: input, shape index: {}]   ;;  %s2619_s6 = inlined_call_operand.vmem [shape: bf16[32,128], index: 6, kind: input, shape index: {}]   ;;  %s2620_s7 = inlined_call_operand.hbm [shape: bf16[32,128], index: 7, kind: input, shape index: {}]   ;;  %s2621_s8 = inlined_call_operand.hbm [shape: bf16[32,128], index: 8, kind: input, shape index: {}]   ;;  %s2622_s9 = inlined_call_operand.vmem [shape: f32[1,128], index: 9, kind: input, shape index: {}]   ;;  %s2623_s10 = inlined_call_operand.hbm [shape: bf16[32,32], index: 10, kind: input, shape index: {}]   ;;  %s2624_s11 = inlined_call_operand.vmem [shape: bf16[64,32], index: 11, kind: input, shape index: {}]   ;;  %s2625_s12 = inlined_call_operand.vmem [shape: f32[1,32], index: 12, kind: input, shape index: {}]   ;;  %s2626_s13 = inlined_call_operand.hbm [shape: bf16[6,8,32], index: 13, kind: output, shape index: {}]  }
   0x1   :  { %2628 = sst [smem:[#allocation26_spill]] %s2615_s2 }
   0x2   :  { %2629 = sst [smem:[#allocation27_spill]] %s2616_s3 }
   0x3   :  { %2630 = sst [smem:[#allocation28_spill]] %s2617_s4 }
   0x4   :  { %2631 = sst [smem:[#allocation29_spill]] %s2618_s5 }
   0x5   :  { %2632 = sst [smem:[#allocation30_spill]] %s2620_s7 }
   0x6   :  { %2633 = sst [smem:[#allocation31_spill]] %s2621_s8 }
   0x7   :  { %2634 = sst [smem:[#allocation32_spill]] %s2626_s13 }
   0x8   :  { %18 = vsyncpa [#allocation6], 0 }
   0x9   :  { %20 = vsyncpa [#allocation6 + $0x1], 0 }
   0xa   :  { %21 = vsyncpa [#allocation9], 0 }
   0xb   :  { %22 = vsyncpa [#allocation12], 0 }
   0xc   :  { %23 = vsyncpa [#allocation15], 0 }
   0xd   :  { %24 = vsyncpa [#allocation18], 0 }
   0xe   :  { %25 = vsyncpa [#allocation7], 0 }
   0xf   :  { %27 = vsyncpa [#allocation7 + $0x1], 0  ;;  %s2246_s25 = smov 0   ;;  %s2248_s26 = smov 0  }
  0x10   :  { %s2250_s27 = smov 0   ;;  %s2252_s28 = smov 0  }
  0x11 LB: > { %s2635_s2 = sld [smem:[#allocation26_spill]]  ;;  %s2270_s15 = sadd.s32 4294967295, %s2160_s28   ;;  %s2160_s28 = sphi %s2252_s28, %s2652_s28   ;;  %s2156_s27 = sphi %s2250_s27, %s2651_s27   ;;  %s2152_s26 = sphi %s2248_s26, %s2650_s26   ;;  %s2148_s25 = sphi %s2246_s25, %s2649_s25  }
  0x12   : > { %p1528_p0 = scmp.ge.s32.totalorder %s2160_s28, 1  ;;  %p54_p1 = scmp.eq.s32.totalorder %s2270_s15, 0 }
  0x13   : > { %p342_p2 = scmp.lt.s32.totalorder %s2160_s28, 7  ;;  %s2162_s17 = smov [#allocation8]  }
  0x14   : > { %s358_s18 = sshll.u32 %s2162_s17, 4  ;;  %s2637_s4 = sld [smem:[#allocation28_spill]]  ;;  %s359_s18 = int_to_ptr.vmem [resolvable:$true] %s358_s18 }
  0x15   : > { %p2276_p4 = pnand %p1528_p0, %p342_p2  ;;  %s2639_s7 = sld [smem:[#allocation30_spill]] }
  0x16   : > { %s2163_s30 = smov [#allocation11]   ;;  %s2165_s13 = smov 4  }
  0x17   : > { %s356_s14 = sshll.u32 %s2635_s2, 4  ;;  %p1690_p5 = pneg %p2276_p4  ;;  %s357_s14 = int_to_ptr.hbm [resolvable:$true] %s356_s14 }
  0x18   : > { %s385_s17 = sshll.u32 %s2163_s30, 4  ;;  %s2164_s2 = smov 64   ;;  %s386_s17 = int_to_ptr.vmem [resolvable:$true] %s385_s17 }
  0x19   : > { %p2287_p6 = pnand %p1690_p5, %p54_p1  ;;  %s2640_s3 = sld [smem:[#allocation27_spill]] }
  0x1a   : > { %s383_s21 = sshll.u32 %s2637_s4, 4  ;;  %s2166_s23 = smov [#allocation14]   ;;  %s384_s21 = int_to_ptr.hbm [resolvable:$true] %s383_s21 }
  0x1b   : > { %s409_s29 = sshll.u32 %s2639_s7, 4  ;;  %s411_s24 = sshll.u32 %s2166_s23, 4  ;;  %s410_s29 = int_to_ptr.hbm [resolvable:$true] %s409_s29  ;;  %s412_s24 = int_to_ptr.vmem [resolvable:$true] %s411_s24 }
  0x1c   : > { %1693 = dma.hbm_to_vmem [thread:$0]  (!%p2287_p6), %s357_s14, 512, %s359_s18, [#allocation9], %s2164_s2, %s2164_s2, %s2165_s13  }
  0x1d   : > { %1699 = dma.hbm_to_vmem [thread:$0]  (!%p2287_p6), %s384_s21, 128, %s386_s17, [#allocation12]  }
  0x1e   : > { %1705 = dma.hbm_to_vmem [thread:$0]  (!%p2287_p6), %s410_s29, 256, %s412_s24, [#allocation15], %s2164_s2, %s2164_s2, %s2165_s13  }
  0x1f   : > { %s371_s4 = sshll.u32 %s2640_s3, 4  ;;  %s2167_s30 = smov [#allocation10]   ;;  %s372_s4 = int_to_ptr.hbm [resolvable:$true] %s371_s4 }
  0x20   : > { %s373_s14 = sshll.u32 %s2167_s30, 4  ;;  %s2641_s5 = sld [smem:[#allocation29_spill]]  ;;  %s374_s14 = int_to_ptr.vmem [resolvable:$true] %s373_s14 }
  0x21   : > { %1696 = dma.hbm_to_vmem [thread:$0]  (!%p2287_p6), %s372_s4, 128, %s374_s14, [#allocation9]  }
  0x22   : > { %s2642_s8 = sld [smem:[#allocation31_spill]]  ;;  %s2168_s23 = smov [#allocation13]  }
  0x23   : > { %s397_s29 = sshll.u32 %s2168_s23, 4  ;;  %s2169_s7 = smov [#allocation16]   ;;  %s398_s29 = int_to_ptr.vmem [resolvable:$true] %s397_s29 }
  0x24   : > { %s425_s4 = sshll.u32 %s2169_s7, 4  ;;  %s440_s14 = sshll.u32 %s2623_s10, 4  ;;  %s426_s4 = int_to_ptr.vmem [resolvable:$true] %s425_s4  ;;  %s441_s14 = int_to_ptr.hbm [resolvable:$true] %s440_s14 }
  0x25   : > { %s2170_s18 = smov [#allocation17]   ;;  %s1527_s17 = sadd.s32 4294967294, %s2160_s28  }
  0x26   : > { %s395_s21 = sshll.u32 %s2641_s5, 4  ;;  %s2334_s19 = sadd.s32 1, %s2160_s28   ;;  %s396_s21 = int_to_ptr.hbm [resolvable:$true] %s395_s21 }
  0x27   : > { %1702 = dma.hbm_to_vmem [thread:$0]  (!%p2287_p6), %s396_s21, 128, %s398_s29, [#allocation12]  }
  0x28   : > { %s423_s20 = sshll.u32 %s2642_s8, 4  ;;  %s442_s21 = sshll.u32 %s2170_s18, 4  ;;  %s424_s20 = int_to_ptr.hbm [resolvable:$true] %s423_s20  ;;  %s443_s21 = int_to_ptr.vmem [resolvable:$true] %s442_s21 }
  0x29   : > { %1708 = dma.hbm_to_vmem [thread:$0]  (!%p2287_p6), %s424_s20, 256, %s426_s4, [#allocation15], %s2164_s2, %s2164_s2, %s2165_s13  }
  0x2a   : > { %1711 = dma.hbm_to_vmem [thread:$0]  (!%p2287_p6), %s441_s14, 256, %s443_s21, [#allocation18], %s2164_s2, %s2164_s2, %s2165_s13  }
  0x2b   : > { %s40_s23 = sadd.s32 1, %s2156_s27  ;;  %s37_s29 = ssub.s32 %s2160_s28, %s2334_s19 }
  0x2c   : > { %p47_p7 = scmp.ne.s32.totalorder %s2156_s27, %s2152_s26  ;;  %p38_p8 = scmp.eq.s32.totalorder %s37_s29, 0 }
  0x2d   : > { %p48_p9 = scmp.eq.s32.totalorder %s2160_s28, 0  ;;  %p53_p10 = scmp.ne.s32.totalorder %s2152_s26, %s2148_s25 }
  0x2e   : > { %p329_p11 = scmp.eq.s32.totalorder %s2270_s15, 5  ;;  %p335_p0 = scmp.eq.s32.totalorder %s1527_s17, 5 }
  0x2f   : > { %s2346_s20 = scalar_select %p38_p8, %s2156_s27, %s40_s23  }
  0x30   : > { %p2350_p12 = por %p54_p1, %p53_p10  ;;  %p2354_p13 = por %p329_p11, %p47_p7 }
  0x31   : > { %p49_p2 = por %p48_p9, %p47_p7  ;;  %s462_s13 = sand.u32 1, %s2156_s27  }
  0x32   : > { %p2359_p5 = por %p335_p0, %p53_p10  ;;  %p1727_p6 = scmp.lt.s32.totalorder %s2160_s28, 6 }
  0x33   : > { %s1537_s4 = sshll.u32 %s462_s13, 2  ;;  %s1538_s24 = sshll.u32 %s2160_s28, 2 }
  0x34   : > { %s470_s18 = scalar_lea.hbm %s2613_s0, %s1538_s24  ;;  %s466_s23 = scalar_lea.vmem [#allocation5], %s1537_s4 }
  0x35   : > { %s472_s21 = sshll.u32 %s470_s18, 4  ;;  %s474_s29 = sshll.u32 %s466_s23, 4  ;;  %s473_s21 = int_to_ptr.hbm [resolvable:$true] %s472_s21  ;;  %s475_s29 = int_to_ptr.vmem [resolvable:$true] %s474_s29 }
  0x36   : > { %p2368_p8 = pnand %p1727_p6, %p49_p2  ;;  %s463_s3 = scalar_lea.sflag [#allocation6], %s462_s13 }
  0x37   : > { %s2048_s5 = sshra.s32 %s473_s21, 4  ;;  %s2055_s4 = scalar_lea.hbm %s2613_s0, 24  ;;  %s2049_s5 = int_to_ptr.hbm [resolvable:$true] %s2048_s5 }
  0x38   : > { %s2050_s8 = scalar_lea.hbm %s2049_s5, 4  ;;  %p2052_p9 = pneg %p2368_p8 }
  0x39   : > { %p2051_p7 = scmp.ne.s32.totalorder %s2049_s5, %s2050_s8  ;;  %p2056_p0 = scmp.lt.s32.totalorder %s2049_s5, %s2613_s0 }
  0x3a   : > { %p2057_p2 = scmp.lt.s32.totalorder %s2055_s4, %s2050_s8 }
  0x3b   : > { %p2053_p10 = pnand %p2052_p9, %p2051_p7 }
  0x3c   : > { %p2058_p6 = por %p2057_p2, %p2056_p0 }
  0x3d   : > { %p2054_p11 = pneg %p2053_p10 }
  0x3f   : > { %p2059_p3 = pnand %p2058_p6, %p2054_p11 }
  0x41   : > { %2062 = shalt.err (!%p2059_p3)
}
  0x42   : > { %1715 = dma.hbm_to_vmem [thread:$0]  (!%p2368_p8), %s473_s21, 64, %s475_s29, %s463_s3  }
  0x43   : > { %483 = sbr.rel (%p2276_p4) target bundleno = 1703 (0x6a7), region = 72  ;;  %s2385_s13 = sand.u32 (!%p2276_p4), 1, %s2152_s26  }
  0x44   : > { %s1540_s23 = sshll.u32 (!%p2276_p4), %s2385_s13, 2  ;;  %s486_s24 = scalar_lea.sflag (!%p2276_p4), [#allocation6], %s2385_s13 }
  0x45   : > { %s2389_s30 = scalar_lea.vmem (!%p2276_p4), [#allocation5], %s1540_s23 }
  0x48   : > { %2123 = dma.done.wait (%p2350_p12), %s486_s24, 64  }
  0x49   : > { %2125 = vsyncadd (%p2350_p12), %s486_s24, 4294967232 }
  0x4a   : > { %2127 = dma.done.wait (%p54_p1), [#allocation9], 640  }
  0x4b   : > { %2129 = vsyncadd (%p54_p1), [#allocation9], 4294966656 }
  0x4c   : > { %2131 = dma.done.wait (%p54_p1), [#allocation12], 256  }
  0x4d   : > { %2133 = vsyncadd (%p54_p1), [#allocation12], 4294967040 }
  0x4e   : > { %2135 = dma.done.wait (%p54_p1), [#allocation15], 512  }
  0x4f   : > { %2137 = vsyncadd (%p54_p1), [#allocation15], 4294966784 }
  0x50   : > { %2139 = dma.done.wait (%p54_p1), [#allocation18], 256  }
  0x51   : > { %2141 = vsyncadd (%p54_p1), [#allocation18], 4294967040  ;;  %s2411_s3 = scalar_lea.vmem [#allocation19], %s1540_s23  ;;  %p2647_p3 = scmp.ne.s32.totalorder %s2270_s15, 0 }
  0x53   : > { %572 = sbr.rel (%p2647_p3) target bundleno = 92 (0x5c), region = 108 }
  0x58   : > { %v573_v0 = vld [vmem:[#allocation11] sm:$0xff]  ;;  %vm574_vm0 = vcmask 261120   ;;  %v576_v1 = vld [vmem:[#allocation13] sm:$0xff]  ;;  %v2171_v2 = vmov 0.0  }
  0x59   : > { %575 = vst.msk [vmem:[#allocation2] sm:$0xff] %vm574_vm0, %v573_v0 }
  0x5a   : > { %577 = vst.msk [vmem:[#allocation3] sm:$0xff] %vm574_vm0, %v576_v1 }
  0x5b   : > { %578 = vst.msk [vmem:[#allocation4] sm:$0xff] %vm574_vm0, %v2171_v2 }
  0x5c PF: > { %v1611_v3 = vld [vmem:[#allocation14 + $0x8] sm:$0xff]  ;;  %v1609_v4 = vld [vmem:[%s2619_s6 + $0x8] sm:$0xff]  ;;  %v1613_v5 = vld [vmem:[#allocation16 + $0x8] sm:$0xff]  ;;  %vm604_vm1 = vcmask 261120   ;;  %s2172_s17 = smov 64   ;;  %s2173_s4 = smov 32   ;;  %v868_v49 = vlaneseq }
  0x5d   : > { %v1610_v6 = vld [vmem:[#allocation14] sm:$0xff]  ;;  %614 = vmatpush.bf16.msra.mxu0 %v1611_v3  ;;  %642 = vmatpush.bf16.msra.mxu1 %v1609_v4  ;;  %v1608_v7 = vld [vmem:[%s2619_s6] sm:$0xff]  ;;  %v1612_v8 = vld [vmem:[#allocation16] sm:$0xff]  ;;  %s2174_s23 = smov 96   ;;  %vm981_vm6 = vcmask 1041409   ;;  %vm983_vm7 = vcmask 1042434  }
  0x5e   : > { %675 = vmatpush.bf16.msra.mxu2 %v1613_v5  ;;  %v582_v12 = vld [vmem:[%s2389_s30] sm:$0xf]  ;;  %v1808_v17 = vld [vmem:[%s2622_s9] ss:$0 sm:$0xff]  ;;  %v1653_v45 = vld [vmem:[%s2614_s1 + $0x10] sm:$0xff]   ;;  %v869_v54 = vshrl.u32 %v868_v49, 7 }
  0x5f   : > { %v1654_v41 = vld [vmem:[%s2614_s1 + $0x18] sm:$0xff]   ;;  %v1630_v46 = vunpack.c.l.bf16 %v1653_v45  ;;  %v1631_v47 = vunpack.c.h.bf16 %v1653_v45  ;;  %v1621_v48 = vld [vmem:[%s2614_s1] sm:$0xff]   ;;  %v1652_v53 = vld [vmem:[%s2614_s1 + $0x8] sm:$0xff]   ;;  %vm985_vm8 = vcmask 1043459   ;;  %vm987_vm9 = vcmask 1044484   ;;  %s1605_s8 = sshll.u32 %s2270_s15, 2 }
  0x60   : > { %v579_v10 = vld [vmem:[#allocation2] sm:$0xff]  ;;  %v1634_v42 = vunpack.c.l.bf16 %v1654_v41  ;;  %v1635_v43 = vunpack.c.h.bf16 %v1654_v41  ;;  %v1622_v50 = vunpack.c.l.bf16 %v1621_v48  ;;  %v1623_v51 = vunpack.c.h.bf16 %v1621_v48  ;;  %1803 = vset.pattern.permute.xlu1 %v869_v54  ;;  %1804 = vset.pattern.permute.xlu0 %v869_v54  ;;  %s2648_s21 = sld [smem:[#allocation32_spill]]  ;;  %s1375_s14 = scalar_lea.sflag [#allocation7], %s2385_s13 }
  0x61   : > { %615 = vmatpush.bf16.msra.mxu0 %v1610_v6  ;;  %643 = vmatpush.bf16.msra.mxu1 %v1608_v7  ;;  %v649_v13 = vpack.c.bf16 %v579_v10, %v579_v10  ;;  %v580_v25 = vld [vmem:[#allocation3] sm:$0xff]  ;;  %v1792_v52 = vpack.i.bf16 %v1631_v47, %v1630_v46  ;;  %v1626_v56 = vunpack.c.l.bf16 %v1652_v53  ;;  %v1627_v57 = vunpack.c.h.bf16 %v1652_v53  ;;  %v865_v59 = vld [vmem:[#allocation10] sm:$0xff] }
  0x62   : > { %v581_v9 = vld [vmem:[#allocation4] sm:$0xff]  ;;  %676 = vmatpush.bf16.msra.mxu2 %v1612_v8  ;;  %v1797_v44 = vpack.i.bf16 %v1635_v43, %v1634_v42  ;;  %v1782_v55 = vpack.i.bf16 %v1623_v51, %v1622_v50  ;;  %1802 = vset.pattern.permute.xlu2 %v869_v54  ;;  %v867_v60 = vperm.slane %v865_v59, 0  ;;  %v902_v1 = vperm.slane %v865_v59, 5 }
  0x63   : > { %v587_v11 = vpack.c.bf16 %v581_v9, %v581_v9  ;;  %v1787_v58 = vpack.i.bf16 %v1627_v57, %v1626_v56  ;;  %v874_v3 = vperm.slane %v865_v59, 1  ;;  %v888_v4 = vperm.slane %v865_v59, 3 }
  0x64   : > { %1567 = vmatmul.msk.bf16.vlgmr.msra.gmra.mxu1 %vm604_vm1, %v582_v12  ;;  %1783 = vrot.lane.b32.xlu2 %v1782_v55, %s2174_s23  ;;  %v909_v5 = vperm.slane %v865_v59, 6  ;;  %v881_v6 = vperm.slane %v865_v59, 2  ;;  %v916_v7 = vperm.slane %v865_v59, 7  ;;  %v895_v8 = vperm.slane %v865_v59, 4 }
  0x65   : > { %1558 = vmatmul.msk.bf16.vlgmr.msra.gmra.mxu0 %vm604_vm1, %v587_v11  ;;  %1576 = vmatmul.msk.bf16.vlgmr.msra.gmra.mxu2 %vm604_vm1, %v649_v13  ;;  %vm989_vm10 = vcmask 1045509   ;;  %vm991_vm11 = vcmask 1046534   ;;  %vm993_vm12 = vcmask 1047559   ;;  %vm996_vm13 = vcmask 64512  }
  0x66   : > { %vm1182_vm14 = vcmask 523264   ;;  %s1385_s29 = scalar_lea.hbm %s2648_s21, %s1605_s8  ;;  %vm1362_vm15 = vcmask 257024   ;;  %s2098_s30 = scalar_lea.hbm %s2648_s21, 24 }
  0x6c   : > { %1788 = vrot.lane.b32.xlu2 %v1787_v58, %s2174_s23 }
  0x74   : > { %872 = vperm.xlu2 %1802, %v867_v60  }
  0x7c   : > { %907 = vperm.xlu2 %1802, %v902_v1  }
  0x84   : > { %921 = vperm.xlu2 %1802, %v916_v7  }
  0xbe   : > { %v1784_v10 = vpop.permute.xlu2 %1783 }
  0xc6   : > { %v1789_v12 = vpop.permute.xlu2 %1788 }
  0xce   : > { %v873_v46 = vpop.permute.xlu2 %872 }
  0xd6   : > { %v908_v47 = vpop.permute.xlu2 %907 }
  0xde   : > { %v922_v48 = vpop.permute.xlu2 %921 }
  0xe1   : > { %v645_v15 = vpop.f32.mrf.mxu1 }
  0xe2   : > { %v617_v14 = vpop.f32.mrf.mxu0 }
  0xe3   : > { %v646_v16 = vadd.f32 %v645_v15, %v617_v14  ;;  %v1790_v14 = vunpack.i.l.bf16 %v1789_v12 }
  0xe8   : > { %v678_v18 = vpop.f32.mrf.mxu2 }
  0xe9   : > { %v682_v19 = vadd.f32 %v678_v18, %v646_v16  ;;  %v647_v21 = vpop.f32.mrf.mxu1  ;;  %v1785_v16 = vunpack.i.l.bf16 %v1784_v10 }
  0xea   : > { %v619_v20 = vpop.f32.mrf.mxu0 }
  0xeb   : > { %v687_v22 = vadd.f32 %v1808_v17, %v682_v19  ;;  %v1786_v20 = vunpack.i.h.bf16 %v1784_v10 }
  0xed   : > { %1810 = vtanh.f32 %v687_v22  ;;  %v1577_v26 = vmul.f32 -1.442695, %v687_v22 }
  0xef   : > { %1812 = vpow2.f32 %v1577_v26 }
  0xf0   : > { %v680_v23 = vpop.f32.mrf.mxu2 }
  0xf3   : > { %v1811_v24 = vpop.eup %1810 }
  0xf4   : > { %714 = vrot.lane.b32.xlu0 %v1811_v24, %s2172_s17 }
  0xf5   : > { %v1813_v27 = vpop.eup %1812 }
  0xf6   : > { %v691_v28 = vadd.f32 1.0, %v1813_v27 }
  0xf8   : > { %1814 = vrcp.f32 %v691_v28  ;;  %v703_v34 = vand.u32 2147483648, %v691_v28  ;;  %vm697_vm3 = vweird.f32 %v691_v28  ;;  %v701_v35 = vand.u32 2147483647, %v691_v28 }
  0xfa   : > { %v704_v37 = vor.u32 1.1754944e-38, %v703_v34  ;;  %vm702_vm5 = vcmp.eq.f32.partialorder %v701_v35, 8.507059e+37 }
  0xfc   : > { %709 = vrot.lane.b32.xlu0 %v580_v25, %s2173_s4 }
  0xfe   : > { %v1815_v29 = vpop.eup %1814 }
  0xff   : > { %v693_v30 = vmul.f32 %v1815_v29, %v691_v28  ;;  %vm698_vm2 = vweird.f32 %v1815_v29 }
 0x100   : > { %vm699_vm4 = vmor %vm697_vm3, %vm698_vm2 }
 0x101   : > { %v694_v31 = vsub.f32 1.0, %v693_v30 }
 0x103   : > { %v695_v32 = vmul.f32 %v1815_v29, %v694_v31 }
 0x104   : > { %1793 = vrot.lane.b32.xlu0 %v1792_v52, %s2174_s23 }
 0x105   : > { %v696_v33 = vadd.f32 %v1815_v29, %v695_v32 }
 0x107   : > { %v700_v36 = vsel %vm699_vm4, %v1815_v29, %v696_v33  ;;  %v1791_v29 = vunpack.i.h.bf16 %v1789_v12 }
 0x108   : > { %v705_v39 = vsel %vm702_vm5, %v704_v37, %v700_v36 }
 0x10c   : > { %886 = vperm.xlu0 %1804, %v881_v6  }
 0x114   : > { %900 = vperm.xlu0 %1804, %v895_v8   ;;  %v2175_v8 = vmov 0  }
 0x115   : > { %1805 = vset.pattern.permute.xlu2 %v2175_v8 }
 0x11c   : > { %1806 = vset.pattern.permute.xlu0 %v2175_v8 }
 0x166   : > { %v715_v38 = vpop.permute.xlu0 %714 }
 0x167   : > { %v717_v40 = vmul.f32 %v715_v38, %v705_v39 }
 0x169   : > { %719 = vrot.lane.b32.xlu1 %v717_v40, %s2173_s4 }
 0x16e   : > { %v710_v61 = vpop.permute.xlu0 %709 }
 0x16f   : > { %v712_v62 = vmul.f32 %v710_v61, %v705_v39 }
 0x171   : > { %1798 = vrot.lane.b32.xlu1 %v1797_v44, %s2174_s23 }
 0x176   : > { %v1794_v26 = vpop.permute.xlu0 %1793 }
 0x177   : > { %v1796_v31 = vunpack.i.h.bf16 %v1794_v26  ;;  %v1795_v33 = vunpack.i.l.bf16 %v1794_v26 }
 0x17e   : > { %v887_v53 = vpop.permute.xlu0 %886 }
 0x186   : > { %v901_v55 = vpop.permute.xlu0 %900 }
 0x1db   : > { %v720_v63 = vpop.permute.xlu1 %719 }
 0x1dc   : > { %v2448_v0 = vadd.f32 %v720_v63, %v712_v62 }
 0x1de   : > { %1816 = vtanh.f32 %v2448_v0 }
 0x1e3   : > { %v1799_v9 = vpop.permute.xlu1 %1798 }
 0x1e4   : > { %v1817_v2 = vpop.eup %1816  ;;  %v1800_v41 = vunpack.i.l.bf16 %v1799_v9  ;;  %v1801_v43 = vunpack.i.h.bf16 %v1799_v9 }
 0x1e5   : > { %725 = vrot.lane.b32.xlu1 %v1817_v2, %s2172_s17  ;;  %s1387_s17 = sshll.u32 %s2411_s3, 4  ;;  %s1388_s17 = int_to_ptr.vmem [resolvable:$true] %s1387_s17 }
 0x1ed   : > { %879 = vperm.xlu1 %1803, %v874_v3  }
 0x1f5   : > { %893 = vperm.xlu1 %1803, %v888_v4  }
 0x1fd   : > { %914 = vperm.xlu1 %1803, %v909_v5  }
 0x205   : > { %1807 = vset.pattern.permute.xlu1 %v2175_v8 }
 0x257   : > { %v726_v11 = vpop.permute.xlu1 %725 }
 0x258   : > { %v2452_v13 = vmul.f32 %v726_v11, %v705_v39 }
 0x25a   : > { %v731_v15 = vrot.slane %v2452_v13, 2  ;;  %v753_v17 = vperm.slane %v2452_v13, 0  ;;  %v730_v18 = vrot.slane %v2452_v13, 1  ;;  %v732_v21 = vrot.slane %v2452_v13, 3 }
 0x25b   : > { %v734_v25 = vrot.slane %v2452_v13, 5  ;;  %v733_v27 = vrot.slane %v2452_v13, 4  ;;  %v735_v36 = vrot.slane %v2452_v13, 6  ;;  %v736_v39 = vrot.slane %v2452_v13, 7 }
 0x25c   : > { %v755_v19 = vperm.slane %v731_v15, 0  ;;  %v801_v22 = vmul.f32 %v1785_v16, %v753_v17  ;;  %v754_v23 = vperm.slane %v730_v18, 0  ;;  %v756_v30 = vperm.slane %v732_v21, 0 }
 0x25d   : > { %v758_v32 = vperm.slane %v734_v25, 0  ;;  %v757_v34 = vperm.slane %v733_v27, 0  ;;  %v759_v40 = vperm.slane %v735_v36, 0  ;;  %v760_v42 = vperm.slane %v736_v39, 0 }
 0x25e   : > { %v803_v24 = vmul.f32 %v1790_v14, %v755_v19  ;;  %817 = vrot.lane.b32.xlu2 %v801_v22, %s2173_s4  ;;  %v802_v28 = vmul.f32 %v1786_v20, %v754_v23  ;;  %v804_v35 = vmul.f32 %v1791_v29, %v756_v30  ;;  %v2491_v29 = vand.u32 127, %v868_v49 }
 0x25f   : > { %v806_v37 = vmul.f32 %v1796_v31, %v758_v32  ;;  %v805_v38 = vmul.f32 %v1795_v33, %v757_v34  ;;  %v807_v44 = vmul.f32 %v1800_v41, %v759_v40  ;;  %v808_v45 = vmul.f32 %v1801_v43, %v760_v42  ;;  %v880_v50 = vpop.permute.xlu1 %879 }
 0x260   : > { %821 = vrot.lane.b32.xlu1 %v803_v24, %s2173_s4  ;;  %819 = vrot.lane.b32.xlu0 %v802_v28, %s2173_s4 }
 0x266   : > { %823 = vrot.lane.b32.xlu2 %v804_v35, %s2173_s4 }
 0x267   : > { %v894_v54 = vpop.permute.xlu1 %893 }
 0x268   : > { %827 = vrot.lane.b32.xlu1 %v806_v37, %s2173_s4  ;;  %825 = vrot.lane.b32.xlu0 %v805_v38, %s2173_s4 }
 0x26e   : > { %829 = vrot.lane.b32.xlu2 %v807_v44, %s2173_s4 }
 0x26f   : > { %v915_v56 = vpop.permute.xlu1 %914 }
 0x270   : > { %831 = vrot.lane.b32.xlu0 %v808_v45, %s2173_s4 }
 0x2b8   : > { %v818_v51 = vpop.permute.xlu2 %817 }
 0x2b9   : > { %v841_v52 = vsel %vm604_vm1, %v818_v51, 0.0 }
 0x2ba   : > { %842 = vadd.xlane.f32.xlu1 %v841_v52 }
 0x2c0   : > { %v824_v61 = vpop.permute.xlu2 %823 }
 0x2c1   : > { %v850_v1 = vsel %vm604_vm1, %v824_v61, 0.0 }
 0x2c8   : > { %v830_v4 = vpop.permute.xlu2 %829 }
 0x2c9   : > { %v859_v6 = vsel %vm604_vm1, %v830_v4, 0.0 }
 0x2d2   : > { %v822_v57 = vpop.permute.xlu1 %821  ;;  %v820_v58 = vpop.permute.xlu0 %819 }
 0x2d3   : > { %v847_v59 = vsel %vm604_vm1, %v822_v57, 0.0  ;;  %v844_v60 = vsel %vm604_vm1, %v820_v58, 0.0 }
 0x2d4   : > { %848 = vadd.xlane.f32.xlu0 %v847_v59  ;;  %845 = vadd.xlane.f32.xlu2 %v844_v60 }
 0x2da   : > { %v828_v62 = vpop.permute.xlu1 %827  ;;  %v826_v63 = vpop.permute.xlu0 %825 }
 0x2db   : > { %v856_v2 = vsel %vm604_vm1, %v828_v62, 0.0  ;;  %v853_v3 = vsel %vm604_vm1, %v826_v63, 0.0 }
 0x2dc   : > { %851 = vadd.xlane.f32.xlu0 %v850_v1  ;;  %857 = vadd.xlane.f32.xlu1 %v856_v2 }
 0x2dd   : > { %854 = vadd.xlane.f32.xlu2 %v853_v3 }
 0x2e2   : > { %v832_v5 = vpop.permute.xlu0 %831 }
 0x2e3   : > { %v862_v7 = vsel %vm604_vm1, %v832_v5, 0.0 }
 0x2e4   : > { %860 = vadd.xlane.f32.xlu0 %v859_v6  ;;  %863 = vadd.xlane.f32.xlu1 %v862_v7 }
 0x32d   : > { %v843_v9 = vpop.xlane.xlu1 %842 }
 0x32e   : > { %v931_v10 = vadd.f32 %v873_v46, %v843_v9 }
 0x330   : > { %948 = vperm.xlu2 %1805, %v931_v10  }
 0x347   : > { %v849_v11 = vpop.xlane.xlu0 %848  ;;  %v846_v12 = vpop.xlane.xlu2 %845 }
 0x348   : > { %v933_v14 = vadd.f32 %v887_v53, %v849_v11  ;;  %v2478_v15 = vadd.f32 %v880_v50, %v846_v12 }
 0x34a   : > { %954 = vperm.xlu0 %1806, %v933_v14   ;;  %951 = vperm.xlu2 %1805, %v2478_v15  }
 0x34f   : > { %v852_v16 = vpop.xlane.xlu0 %851  ;;  %v858_v20 = vpop.xlane.xlu1 %857 }
 0x350   : > { %v855_v17 = vpop.xlane.xlu2 %854  ;;  %v2481_v18 = vadd.f32 %v894_v54, %v852_v16  ;;  %v2484_v22 = vadd.f32 %v908_v47, %v858_v20 }
 0x351   : > { %v935_v19 = vadd.f32 %v901_v55, %v855_v17 }
 0x352   : > { %957 = vperm.xlu1 %1807, %v2481_v18  }
 0x353   : > { %960 = vperm.xlu2 %1805, %v935_v19  }
 0x357   : > { %v861_v21 = vpop.xlane.xlu0 %860  ;;  %v864_v24 = vpop.xlane.xlu1 %863 }
 0x358   : > { %v937_v23 = vadd.f32 %v915_v56, %v861_v21  ;;  %v2487_v25 = vadd.f32 %v922_v48, %v864_v24 }
 0x35a   : > { %963 = vperm.xlu1 %1807, %v2484_v22  }
 0x35b   : > { %966 = vperm.xlu2 %1805, %v937_v23  }
 0x362   : > { %969 = vperm.xlu1 %1807, %v2487_v25  }
 0x38a   : > { %v949_v26 = vpop.permute.xlu2 %948 }
 0x38b   : > { %v973_v34 = vperm.slane %v949_v26, %v2491_v29 }
 0x3a4   : > { %v952_v27 = vpop.permute.xlu2 %951 }
 0x3a5   : > { %v974_v32 = vperm.slane %v952_v27, %v2491_v29 }
 0x3a7   : > { %v982_v37 = vsel %vm981_vm6, %v974_v32, %v973_v34 }
 0x3ad   : > { %v961_v30 = vpop.permute.xlu2 %960 }
 0x3ae   : > { %v977_v40 = vperm.slane %v961_v30, %v2491_v29 }
 0x3b5   : > { %v967_v41 = vpop.permute.xlu2 %966 }
 0x3b6   : > { %v979_v44 = vperm.slane %v967_v41, %v2491_v29 }
 0x3bc   : > { %v955_v31 = vpop.permute.xlu0 %954 }
 0x3bd   : > { %v975_v33 = vperm.slane %v955_v31, %v2491_v29 }
 0x3bf   : > { %v984_v38 = vsel %vm983_vm7, %v975_v33, %v982_v37 }
 0x3c4   : > { %v958_v28 = vpop.permute.xlu1 %957 }
 0x3c5   : > { %v976_v35 = vperm.slane %v958_v28, %v2491_v29 }
 0x3c7   : > { %v986_v49 = vsel %vm985_vm8, %v976_v35, %v984_v38 }
 0x3c8   : > { %v988_v42 = vsel %vm987_vm9, %v977_v40, %v986_v49 }
 0x3cc   : > { %v964_v36 = vpop.permute.xlu1 %963 }
 0x3cd   : > { %v978_v39 = vperm.slane %v964_v36, %v2491_v29 }
 0x3cf   : > { %v990_v43 = vsel %vm989_vm10, %v978_v39, %v988_v42 }
 0x3d0   : > { %v992_v47 = vsel %vm991_vm11, %v979_v44, %v990_v43 }
 0x3d4   : > { %v970_v45 = vpop.permute.xlu1 %969 }
 0x3d5   : > { %v980_v46 = vperm.slane %v970_v45, %v2491_v29 }
 0x3d7   : > { %v994_v48 = vsel %vm993_vm12, %v980_v46, %v992_v47 }
 0x3d8   : > { %v997_v50 = vsel %vm996_vm13, %v994_v48, -inf }
 0x3d9   : > { %998 = vmax.xlane.f32.xlu2 %v997_v50 }
 0x44c   : > { %v999_v51 = vpop.xlane.xlu2 %998 }
 0x44d   : > { %v1003_v52 = vperm.slane %v999_v51, 2  ;;  %v1001_v53 = vperm.slane %v999_v51, 0  ;;  %v1005_v56 = vperm.slane %v999_v51, 4  ;;  %v1002_v57 = vperm.slane %v999_v51, 1 }
 0x44e   : > { %v1007_v63 = vperm.slane %v999_v51, 6  ;;  %v1004_v2 = vperm.slane %v999_v51, 3  ;;  %v1006_v9 = vperm.slane %v999_v51, 5 }
 0x44f   : > { %v1019_v54 = vsub.f32 %v933_v14, %v1003_v52  ;;  %v1017_v55 = vsub.f32 %v931_v10, %v1001_v53  ;;  %v1021_v60 = vsub.f32 %v935_v19, %v1005_v56  ;;  %v1018_v61 = vsub.f32 %v2478_v15, %v1002_v57 }
 0x450   : > { %v1023_v5 = vsub.f32 %v937_v23, %v1007_v63  ;;  %v1020_v6 = vsub.f32 %v2481_v18, %v1004_v2  ;;  %v1022_v12 = vsub.f32 %v2484_v22, %v1006_v9  ;;  %v1008_v15 = vperm.slane %v999_v51, 7 }
 0x451   : > { %v1029_v58 = vmul.f32 1.442695, %v1019_v54  ;;  %v1025_v59 = vmul.f32 1.442695, %v1017_v55  ;;  %v1033_v62 = vmul.f32 1.442695, %v1021_v60  ;;  %v1239_v63 = vpack.c.bf16 %v2452_v13, %v2452_v13 }
 0x452   : > { %v1027_v1 = vmul.f32 1.442695, %v1018_v61  ;;  %v1037_v7 = vmul.f32 1.442695, %v1023_v5  ;;  %v1031_v8 = vmul.f32 1.442695, %v1020_v6  ;;  %v1024_v18 = vsub.f32 %v2487_v25, %v1008_v15 }
 0x453   : > { %1818 = vpow2.f32 %v1029_v58  ;;  %v1035_v14 = vmul.f32 1.442695, %v1022_v12  ;;  %v1655_v5 = vld [vmem:[#allocation8 + $0x8] sm:$0xff]   ;;  %v1637_v6 = vld [vmem:[#allocation8] sm:$0xff]  }
 0x454   : > { %1820 = vpow2.f32 %v1025_v59  ;;  %v1039_v19 = vmul.f32 1.442695, %v1024_v18  ;;  %v1639_v9 = vunpack.c.h.bf16 %v1637_v6 }
 0x455   : > { %1822 = vpow2.f32 %v1033_v62 }
 0x456   : > { %1824 = vpow2.f32 %v1027_v1 }
 0x457   : > { %1826 = vpow2.f32 %v1037_v7  ;;  %v1614_v7 = vld [vmem:[#allocation17] sm:$0xff] }
 0x458   : > { %1828 = vpow2.f32 %v1031_v8  ;;  %v1642_v8 = vunpack.c.l.bf16 %v1655_v5 }
 0x459   : > { %v2510_v3 = vpop.eup %1818  ;;  %1830 = vpow2.f32 %v1035_v14 }
 0x45a   : > { %v2512_v4 = vpop.eup %1820  ;;  %1056 = vperm.xlu0 %1806, %v2510_v3   ;;  %1832 = vpow2.f32 %v1039_v19 }
 0x45b   : > { %1050 = vperm.xlu1 %1807, %v2512_v4   ;;  %v1823_v10 = vpop.eup %1822 }
 0x45c   : > { %v1825_v11 = vpop.eup %1824 }
 0x45d   : > { %v1827_v16 = vpop.eup %1826 }
 0x45e   : > { %v1829_v17 = vpop.eup %1828 }
 0x45f   : > { %v1831_v20 = vpop.eup %1830 }
 0x460   : > { %v1833_v21 = vpop.eup %1832 }
 0x462   : > { %1062 = vperm.xlu0 %1806, %v1823_v10  }
 0x463   : > { %1053 = vperm.xlu1 %1807, %v1825_v11  }
 0x46a   : > { %1068 = vperm.xlu0 %1806, %v1827_v16  }
 0x46b   : > { %1059 = vperm.xlu1 %1807, %v1829_v17  }
 0x473   : > { %1065 = vperm.xlu1 %1807, %v1831_v20  }
 0x47b   : > { %1071 = vperm.xlu1 %1807, %v1833_v21  }
 0x4cc   : > { %v1057_v26 = vpop.permute.xlu0 %1056 }
 0x4cd   : > { %v1051_v23 = vpop.permute.xlu1 %1050  ;;  %v1075_v25 = vperm.slane %v1057_v26, %v2491_v29 }
 0x4ce   : > { %v1073_v30 = vperm.slane %v1051_v23, %v2491_v29 }
 0x4d4   : > { %v1063_v22 = vpop.permute.xlu0 %1062 }
 0x4d5   : > { %v1054_v24 = vpop.permute.xlu1 %1053  ;;  %v1077_v37 = vperm.slane %v1063_v22, %v2491_v29 }
 0x4d6   : > { %v1074_v28 = vperm.slane %v1054_v24, %v2491_v29 }
 0x4d8   : > { %v1081_v31 = vsel %vm981_vm6, %v1074_v28, %v1073_v30 }
 0x4d9   : > { %v1082_v34 = vsel %vm983_vm7, %v1075_v25, %v1081_v31  ;;  %v1618_v31 = vld [vmem:[%s2624_s11 + $0x10] sm:$0xff] }
 0x4dc   : > { %v1069_v38 = vpop.permute.xlu0 %1068 }
 0x4dd   : > { %v1060_v27 = vpop.permute.xlu1 %1059  ;;  %v1079_v40 = vperm.slane %v1069_v38, %v2491_v29  ;;  %v1617_v38 = vld [vmem:[%s2624_s11 + $0x8] sm:$0xff] }
 0x4de   : > { %v1076_v32 = vperm.slane %v1060_v27, %v2491_v29  ;;  %v1643_v27 = vunpack.c.h.bf16 %v1655_v5 }
 0x4e0   : > { %v1083_v35 = vsel %vm985_vm8, %v1076_v32, %v1082_v34 }
 0x4e1   : > { %v1084_v49 = vsel %vm987_vm9, %v1077_v37, %v1083_v35 }
 0x4e5   : > { %v1066_v33 = vpop.permute.xlu1 %1065 }
 0x4e6   : > { %v1078_v36 = vperm.slane %v1066_v33, %v2491_v29 }
 0x4e8   : > { %v1085_v39 = vsel %vm989_vm10, %v1078_v36, %v1084_v49  ;;  %v1657_v36 = vld [vmem:[#allocation8 + $0x18] sm:$0xff]  }
 0x4e9   : > { %v1086_v43 = vsel %vm991_vm11, %v1079_v40, %v1085_v39 }
 0x4ed   : > { %v1072_v41 = vpop.permute.xlu1 %1071 }
 0x4ee   : > { %v1080_v42 = vperm.slane %v1072_v41, %v2491_v29 }
 0x4f0   : > { %v1087_v44 = vsel %vm993_vm12, %v1080_v42, %v1086_v43  ;;  %v1650_v43 = vunpack.c.l.bf16 %v1657_v36 }
 0x4f1   : > { %v1089_v45 = vsel %vm996_vm13, %v1087_v44, 0.0 }
 0x4f2   : > { %1090 = vadd.xlane.f32.xlu2 %v1089_v45 }
 0x565   : > { %v1091_v46 = vpop.xlane.xlu2 %1090 }
 0x566   : > { %1834 = vrcp.f32 %v1091_v46 }
 0x56c   : > { %v1835_v47 = vpop.eup %1834 }
 0x56d   : > { %v1096_v48 = vperm.slane %v1835_v47, 2  ;;  %v1095_v50 = vperm.slane %v1835_v47, 1  ;;  %v1094_v51 = vperm.slane %v1835_v47, 0  ;;  %v1098_v29 = vperm.slane %v1835_v47, 4 }
 0x56e   : > { %v1097_v55 = vperm.slane %v1835_v47, 3  ;;  %v1100_v58 = vperm.slane %v1835_v47, 6  ;;  %v1099_v59 = vperm.slane %v1835_v47, 5  ;;  %v1101_v62 = vperm.slane %v1835_v47, 7  ;;  %v1616_v47 = vld [vmem:[%s2624_s11] sm:$0xff] }
 0x56f   : > { %v1112_v52 = vmul.f32 %v2510_v3, %v1096_v48  ;;  %v1111_v53 = vmul.f32 %v1825_v11, %v1095_v50  ;;  %v1110_v54 = vmul.f32 %v2512_v4, %v1094_v51  ;;  %v1114_v56 = vmul.f32 %v1823_v10, %v1098_v29  ;;  %v1615_v4 = vld [vmem:[#allocation17 + $0x8] sm:$0xff] }
 0x570   : > { %v1113_v57 = vmul.f32 %v1829_v17, %v1097_v55  ;;  %v1116_v60 = vmul.f32 %v1827_v16, %v1100_v58  ;;  %v1115_v61 = vmul.f32 %v1831_v20, %v1099_v59  ;;  %v1117_v1 = vmul.f32 %v1833_v21, %v1101_v62  ;;  %1348 = vmatpush.bf16.msrb.mxu0 %v1615_v4  ;;  %v1619_v20 = vld [vmem:[%s2624_s11 + $0x18] sm:$0xff] }
 0x571   : > { %1146 = vperm.xlu2 %1805, %v1112_v52   ;;  %1141 = vperm.xlu1 %1807, %v1111_v53  }
 0x572   : > { %1136 = vperm.xlu0 %1806, %v1110_v54   ;;  %1315 = vmatpush.bf16.msra.mxu3 %v1619_v20 }
 0x574   : > { %1349 = vmatpush.bf16.msrb.mxu0 %v1614_v7 }
 0x576   : > { %1316 = vmatpush.bf16.msra.mxu3 %v1618_v31 }
 0x579   : > { %1364 = vrot.lane.b32.xlu2 %v2452_v13, %s2173_s4  ;;  %1156 = vperm.xlu1 %1807, %v1114_v56   ;;  %v1638_v13 = vunpack.c.l.bf16 %v1637_v6  ;;  %v1651_v6 = vunpack.c.h.bf16 %v1657_v36 }
 0x57a   : > { %1151 = vperm.xlu0 %1806, %v1113_v57   ;;  %1317 = vmatpush.bf16.msra.mxu3 %v1617_v38 }
 0x57e   : > { %1318 = vmatpush.bf16.msra.mxu3 %v1616_v47 }
 0x581   : > { %1166 = vperm.xlu1 %1807, %v1116_v60  }
 0x582   : > { %1161 = vperm.xlu0 %1806, %v1115_v61  }
 0x589   : > { %1325 = vrot.lane.b32.xlu1 %v1239_v63, %s2173_s4  ;;  %s1389_s4 = sshll.u32 %s1385_s29, 4  ;;  %s1390_s4 = int_to_ptr.hbm [resolvable:$true] %s1389_s4 }
 0x58a   : > { %1171 = vperm.xlu0 %1806, %v1117_v1   ;;  %s2092_s18 = sshra.s32 %s1390_s4, 4  ;;  %s2093_s18 = int_to_ptr.hbm [resolvable:$true] %s2092_s18 }
 0x58b   : > { %s2094_s15 = scalar_lea.hbm %s2093_s18, 4  ;;  %p2099_p8 = scmp.lt.s32.totalorder %s2093_s18, %s2648_s21 }
 0x58c   : > { %p2095_p1 = scmp.ne.s32.totalorder %s2093_s18, %s2094_s15  ;;  %p2100_p7 = scmp.lt.s32.totalorder %s2098_s30, %s2094_s15 }
 0x58e   : > { %p2096_p4 = pnand %p2095_p1, %p2354_p13  ;;  %p2101_p9 = por %p2100_p7, %p2099_p8 }
 0x590   : > { %p2097_p12 = pneg %p2096_p4 }
 0x592   : > { %1369 = vrot.lane.b32.xlu0 %v2448_v0, %s2174_s23  ;;  %v1656_v0 = vld [vmem:[#allocation8 + $0x10] sm:$0xff]   ;;  %p2102_p10 = pnand %p2101_p9, %p2097_p12 }
 0x593   : > { %v1646_v23 = vunpack.c.l.bf16 %v1656_v0  ;;  %v1647_v46 = vunpack.c.h.bf16 %v1656_v0 }
 0x5cb   : > { %v1147_v2 = vpop.permute.xlu2 %1146 }
 0x5cc   : > { %v1176_v10 = vmul.f32 %v1642_v8, %v1147_v2 }
 0x5ce   : > { %v1197_v16 = vsel %vm1182_vm14, %v1176_v10, 0.0 }
 0x5cf   : > { %v1198_v24 = vrot.slane %v1197_v16, 4 }
 0x5d1   : > { %v1199_v34 = vadd.f32 %v1198_v24, %v1197_v16 }
 0x5d3   : > { %v1365_v3 = vpop.permute.xlu2 %1364  ;;  %v1200_v44 = vrot.slane %v1199_v34, 2 }
 0x5d4   : > { %1367 = vst.msk [vmem:[#allocation2] sm:$0xff] %vm604_vm1, %v1365_v3 }
 0x5d5   : > { %v1201_v56 = vadd.f32 %v1200_v44, %v1199_v34 }
 0x5d7   : > { %v1202_v4 = vrot.slane %v1201_v56, 1 }
 0x5d9   : > { %v1203_v0 = vadd.f32 %v1202_v4, %v1201_v56  ;;  %v1809_v56 = vld [vmem:[%s2625_s12] ss:$0 sm:$0xff] }
 0x5e3   : > { %v1142_v11 = vpop.permute.xlu1 %1141 }
 0x5e4   : > { %v1175_v12 = vmul.f32 %v1639_v9, %v1142_v11  ;;  %v1137_v14 = vpop.permute.xlu0 %1136 }
 0x5e5   : > { %v1174_v15 = vmul.f32 %v1638_v13, %v1137_v14 }
 0x5e6   : > { %v1190_v17 = vsel %vm1182_vm14, %v1175_v12, 0.0 }
 0x5e7   : > { %v1191_v18 = vrot.slane %v1190_v17, 4  ;;  %v1183_v19 = vsel %vm1182_vm14, %v1174_v15, 0.0 }
 0x5e8   : > { %v1184_v21 = vrot.slane %v1183_v19, 4 }
 0x5e9   : > { %v1192_v26 = vadd.f32 %v1191_v18, %v1190_v17 }
 0x5ea   : > { %v1185_v22 = vadd.f32 %v1184_v21, %v1183_v19 }
 0x5eb   : > { %v1193_v28 = vrot.slane %v1192_v26, 2  ;;  %v1157_v30 = vpop.permute.xlu1 %1156 }
 0x5ec   : > { %v1186_v32 = vrot.slane %v1185_v22, 2  ;;  %v1178_v25 = vmul.f32 %v1646_v23, %v1157_v30  ;;  %v1152_v33 = vpop.permute.xlu0 %1151 }
 0x5ed   : > { %v1177_v35 = vmul.f32 %v1643_v27, %v1152_v33  ;;  %v1194_v49 = vadd.f32 %v1193_v28, %v1192_v26  ;;  %v1246_v28 = vpack.c.bf16 %v1203_v0, %v1203_v0 }
 0x5ee   : > { %v1211_v37 = vsel %vm1182_vm14, %v1178_v25, 0.0  ;;  %v1187_v41 = vadd.f32 %v1186_v32, %v1185_v22 }
 0x5ef   : > { %v1212_v39 = vrot.slane %v1211_v37, 4  ;;  %v1204_v40 = vsel %vm1182_vm14, %v1177_v35, 0.0  ;;  %v1195_v50 = vrot.slane %v1194_v49, 1  ;;  %v1270_v38 = vunpack.c.l.b16 %v1246_v28 }
 0x5f0   : > { %v1205_v42 = vrot.slane %v1204_v40, 4  ;;  %v1188_v53 = vrot.slane %v1187_v41, 1 }
 0x5f1   : > { %v1213_v45 = vadd.f32 %v1212_v39, %v1211_v37  ;;  %v1196_v60 = vadd.f32 %v1195_v50, %v1194_v49 }
 0x5f2   : > { %v1206_v48 = vadd.f32 %v1205_v42, %v1204_v40  ;;  %v1189_v1 = vadd.f32 %v1188_v53, %v1187_v41 }
 0x5f3   : > { %v1214_v51 = vrot.slane %v1213_v45, 2  ;;  %v1167_v52 = vpop.permute.xlu1 %1166  ;;  %v1245_v8 = vpack.c.bf16 %v1196_v60, %v1196_v60 }
 0x5f4   : > { %v1207_v54 = vrot.slane %v1206_v48, 2  ;;  %v1180_v29 = vmul.f32 %v1650_v43, %v1167_v52  ;;  %v1162_v55 = vpop.permute.xlu0 %1161  ;;  %v1244_v11 = vpack.c.bf16 %v1189_v1, %v1189_v1 }
 0x5f5   : > { %v1179_v57 = vmul.f32 %v1647_v46, %v1162_v55  ;;  %v1215_v61 = vadd.f32 %v1214_v51, %v1213_v45  ;;  %v1269_v19 = vunpack.c.l.b16 %v1245_v8 }
 0x5f6   : > { %v1208_v58 = vadd.f32 %v1207_v54, %v1206_v48  ;;  %v1225_v59 = vsel %vm1182_vm14, %v1180_v29, 0.0  ;;  %v1268_v24 = vunpack.c.l.b16 %v1244_v11 }
 0x5f7   : > { %v1226_v62 = vrot.slane %v1225_v59, 4  ;;  %v1218_v63 = vsel %vm1182_vm14, %v1179_v57, 0.0  ;;  %v1216_v9 = vrot.slane %v1215_v61, 1 }
 0x5f8   : > { %v1209_v2 = vrot.slane %v1208_v58, 1  ;;  %v1219_v3 = vrot.slane %v1218_v63, 4  ;;  %v1276_v33 = vsel %vm981_vm6, %v1269_v19, %v1268_v24 }
 0x5f9   : > { %v1227_v5 = vadd.f32 %v1226_v62, %v1225_v59  ;;  %v1217_v20 = vadd.f32 %v1216_v9, %v1215_v61  ;;  %v1277_v40 = vsel %vm983_vm7, %v1270_v38, %v1276_v33 }
 0x5fa   : > { %v1220_v7 = vadd.f32 %v1219_v3, %v1218_v63  ;;  %v1210_v12 = vadd.f32 %v1209_v2, %v1208_v58 }
 0x5fb   : > { %v1228_v13 = vrot.slane %v1227_v5, 2  ;;  %v1326_v10 = vpop.permute.xlu1 %1325  ;;  %v1248_v32 = vpack.c.bf16 %v1217_v20, %v1217_v20 }
 0x5fc   : > { %v1221_v14 = vrot.slane %v1220_v7, 2  ;;  %v1172_v15 = vpop.permute.xlu0 %1171  ;;  %1603 = vmatmul.msk.bf16.vlgmr.msrb.gmra.mxu0 %vm604_vm1, %v1326_v10  ;;  %v1247_v26 = vpack.c.bf16 %v1210_v12, %v1210_v12 }
 0x5fd   : > { %v1229_v16 = vadd.f32 %v1228_v13, %v1227_v5  ;;  %v1181_v17 = vmul.f32 %v1651_v6, %v1172_v15  ;;  %v1272_v39 = vunpack.c.l.b16 %v1248_v32 }
 0x5fe   : > { %v1222_v18 = vadd.f32 %v1221_v14, %v1220_v7  ;;  %v1271_v34 = vunpack.c.l.b16 %v1247_v26 }
 0x5ff   : > { %v1230_v21 = vrot.slane %v1229_v16, 1  ;;  %v1232_v23 = vsel %vm1182_vm14, %v1181_v17, 0.0 }
 0x600   : > { %v1223_v27 = vrot.slane %v1222_v18, 1  ;;  %v1233_v22 = vrot.slane %v1232_v23, 4  ;;  %v1278_v42 = vsel %vm985_vm8, %v1271_v34, %v1277_v40 }
 0x601   : > { %v1231_v25 = vadd.f32 %v1230_v21, %v1229_v16  ;;  %v1279_v47 = vsel %vm987_vm9, %v1272_v39, %v1278_v42 }
 0x602   : > { %v1224_v30 = vadd.f32 %v1223_v27, %v1222_v18  ;;  %v1234_v31 = vadd.f32 %v1233_v22, %v1232_v23 }
 0x603   : > { %v1250_v41 = vpack.c.bf16 %v1231_v25, %v1231_v25 }
 0x604   : > { %v1249_v35 = vpack.c.bf16 %v1224_v30, %v1224_v30  ;;  %v1235_v36 = vrot.slane %v1234_v31, 2  ;;  %v1370_v37 = vpop.permute.xlu0 %1369 }
 0x605   : > { %1372 = vst.msk [vmem:[#allocation3] sm:$0xff] %vm604_vm1, %v1370_v37  ;;  %v1274_v46 = vunpack.c.l.b16 %v1250_v41 }
 0x606   : > { %v1236_v49 = vadd.f32 %v1235_v36, %v1234_v31  ;;  %v1273_v43 = vunpack.c.l.b16 %v1249_v35 }
 0x608   : > { %v1237_v44 = vrot.slane %v1236_v49, 1  ;;  %v1280_v50 = vsel %vm989_vm10, %v1273_v43, %v1279_v47 }
 0x609   : > { %v1281_v52 = vsel %vm991_vm11, %v1274_v46, %v1280_v50 }
 0x60a   : > { %v1238_v45 = vadd.f32 %v1237_v44, %v1236_v49 }
 0x60c   : > { %v1251_v48 = vpack.c.bf16 %v1238_v45, %v1238_v45 }
 0x60e   : > { %v1275_v51 = vunpack.c.l.b16 %v1251_v48 }
 0x610   : > { %v1282_v53 = vsel %vm993_vm12, %v1275_v51, %v1281_v52 }
 0x611   : > { %v1283_v54 = vpack.c.b16 %v1282_v53, %v1282_v53 }
 0x613   : > { %1594 = vmatmul.msk.bf16.vlgmr.msra.gmra.mxu3 %vm1182_vm14, %v1283_v54 }
 0x679   : > { %v1351_v29 = vpop.f32.mrf.mxu0 }
 0x681   : > { %v1353_v55 = vpop.f32.mrf.mxu0 }
 0x696   : > { %v1320_v57 = vpop.f32.mrf.mxu3 }
 0x697   : > { %v1352_v58 = vadd.f32 %v1351_v29, %v1320_v57 }
 0x699   : > { %v1359_v59 = vadd.f32 %v1809_v56, %v1352_v58 }
 0x69b   : > { %1836 = vtanh.f32 %v1359_v59 }
 0x69e   : > { %v1322_v60 = vpop.f32.mrf.mxu3 }
 0x6a1   : > { %v1837_v61 = vpop.eup %1836 }
 0x6a2   : > { %1373 = vst.msk [vmem:[#allocation4] sm:$0xff] %vm604_vm1, %v1837_v61  ;;  %v1361_v62 = vpack.c.bf16 %v1837_v61, %v1837_v61 }
 0x6a4   : > { %1363 = vst.msk [vmem:[%s2411_s3] sm:$0xf] %vm1362_vm15, %v1361_v62 }
 0x6a5   : > { %2105 = shalt.err (!%p2102_p10)
}
 0x6a6   : > { %1688 = dma.vmem_to_hbm [thread:$0]  (%p2354_p13), %s1388_s17, 64, %s1390_s4, %s1375_s14  }
 0x6a7 PF: > { %p1735_p11 = scmp.ge.s32.totalorder %s2160_s28, 2  ;;  %s1401_s13 = sand.u32 1, %s2148_s25  }
 0x6a8   : > { %s1402_s3 = scalar_lea.sflag [#allocation7], %s1401_s13 }
 0x6a9   : > { %p1717_p0 = pnand %p1735_p11, %p2359_p5 }
 0x6ab   : > { %p1718_p2 = pneg %p1717_p0 }
 0x6ad   : > { %2143 = dma.done.wait (%p1718_p2), %s1402_s3, 64  }
 0x6ae   : > { %2145 = vsyncadd (%p1718_p2), %s1402_s3, 4294967232  ;;  %p30_p6 = scmp.ge.s32.totalorder %s2334_s19, 8   ;;  %s2649_s25 = smov %s2152_s26 }
 0x6af   : > { %s2650_s26 = smov %s2156_s27  ;;  %s2651_s27 = smov %s2346_s20 }
 0x6b0   : > { %s2652_s28 = smov %s2334_s19  ;;  %32 = sbr.rel (!%p30_p6) target bundleno = 17 (0x11), region = 149 }
 0x6b5   :  { %1408 = vsyncpa [#allocation6], 1 }
 0x6b6   :  { %1410 = vsyncpa [#allocation6 + $0x1], 1 }
 0x6b7   :  { %1411 = vsyncpa [#allocation9], 1 }
 0x6b8   :  { %1412 = vsyncpa [#allocation12], 1 }
 0x6b9   :  { %1413 = vsyncpa [#allocation15], 1 }
 0x6ba   :  { %1414 = vsyncpa [#allocation18], 1 }
 0x6bb   :  { %1415 = vsyncpa [#allocation7], 1 }
 0x6bc   :  { %1417 = vsyncpa [#allocation7 + $0x1], 1 }

</bundles_post_ra>
